<compile_context>
chip_gen: v5e
topology: v5e:2x2
jax: 0.10.0
libtpu: 0.0.40
codegen_flags: <defaults>
</compile_context>

<pallas_src>
import numpy as np
import jax
import jax.numpy as jnp
from jax.experimental import pallas as pl
from jax.experimental.pallas import tpu as pltpu

K_CHEB = 5        # Chebyshev polynomial order S=5
NOUT_PAD = 128    # classes padded to a full lane width for a dense store


# ----------------------------- Pallas kernel -------------------------------

def chebnet_kernel(l_ref, x_ref,
                   wc1_ref, bc1_ref, wc2_ref, bc2_ref, wc3_ref, bc3_ref,
                   w1_ref, b1_ref, w2_ref, b2_ref, o_ref):
    """Whole ChebNet forward for one graph (one grid step)."""
    L = l_ref[...]                               # (n, n) bf16, resident in VMEM
    h = x_ref[...].astype(jnp.float32)           # (n, C_in) f32

    def cheb_layer(h, w, b):
        # T_0 = h, T_1 = L h, T_k = 2 L T_{k-1} - T_{k-2}.
        # Elementwise math stays f32 (v5e has no bf16 VPU); only matmul
        # operands are bf16, always accumulating in f32 on the MXU.
        t_prev = h
        t_cur = jnp.dot(L, h.astype(jnp.bfloat16),
                        preferred_element_type=jnp.float32)
        ts = [t_prev, t_cur]
        for _ in range(2, K_CHEB):
            t_next = 2.0 * jnp.dot(L, t_cur.astype(jnp.bfloat16),
                                   preferred_element_type=jnp.float32) - t_prev
            ts.append(t_next)
            t_prev, t_cur = t_cur, t_next
        # One concatenated weight matmul: (n, K*C_in) @ (K*C_in, C_out)
        # instead of K tiny matmuls with a starved contraction dim.
        tcat = jnp.concatenate(ts, axis=-1).astype(jnp.bfloat16)
        acc = jnp.dot(tcat, w, preferred_element_type=jnp.float32)
        return jnp.maximum(acc + b, 0.0)

    h = cheb_layer(h, wc1_ref[...], bc1_ref[...])   # (n, 64)
    h = cheb_layer(h, wc2_ref[...], bc2_ref[...])   # (n, 128)
    h = cheb_layer(h, wc3_ref[...], bc3_ref[...])   # (n, 128)

    pooled = jnp.mean(h, axis=0, keepdims=True)     # global_mean_pool -> (1,128)

    # BatchNorm1d (eval) was folded into w1/b1 at trace time.
    hfc = jnp.maximum(
        jnp.dot(pooled, w1_ref[...], preferred_element_type=jnp.float32)
        + b1_ref[...], 0.0)                          # (1, 32)

    # fc2 is padded to 128 classes; pad columns carry a -1e9 bias so they
    # contribute nothing to the softmax normalization.
    logits = jnp.dot(hfc, w2_ref[...],
                     preferred_element_type=jnp.float32) + b2_ref[...]  # (1,128)

    m = jnp.max(logits, axis=1, keepdims=True)
    z = logits - m
    lse = jnp.log(jnp.sum(jnp.exp(z), axis=1, keepdims=True))
    o_ref[...] = jnp.broadcast_to(z - lse, o_ref.shape)   # dense (8,128) store


# ------------------------------- Wrapper ------------------------------------

def chebnet_forward(L, x, params):
    """L: (B, n, n) per-graph scaled Laplacians, x: (B, n, C_in) features."""
    B, n, _ = L.shape
    ninp = x.shape[-1]
    nout = params["W2"].shape[-1]

    # ---- trace-time parameter preprocessing (zero runtime cost) ----
    # Concatenated Chebyshev weights: (K, C_in, C_out) -> (K*C_in, C_out)
    wc1 = params["Wc1"].reshape(K_CHEB * ninp, -1).astype(jnp.bfloat16)
    wc2 = params["Wc2"].reshape(K_CHEB * params["Wc2"].shape[1], -1).astype(jnp.bfloat16)
    wc3 = params["Wc3"].reshape(K_CHEB * params["Wc3"].shape[1], -1).astype(jnp.bfloat16)
    bc1, bc2, bc3 = params["bc1"], params["bc2"], params["bc3"]

    # Fold eval-mode BatchNorm1d into fc1:  (p - mu) * s + beta  with
    # s = gamma * rsqrt(var + eps)  =>  W1' = diag(s) @ W1,
    # b1' = b1 + (beta - mu * s) @ W1.
    s = params["bn_gamma"] * jax.lax.rsqrt(params["bn_var"] + 1e-5)      # (1,128)
    w1f = (params["W1"] * s.reshape(-1, 1)).astype(jnp.float32)          # (128,32)
    b1f = (params["b1"]
           + (params["bn_beta"] - params["bn_mean"] * s) @ params["W1"])  # (1,32)

    # Pad fc2 to a lane-dense 128-class output; padded classes get a huge
    # negative bias so log_softmax over 128 lanes == log_softmax over `nout`.
    w2p = jnp.pad(params["W2"], ((0, 0), (0, NOUT_PAD - nout)))
    b2p = jnp.concatenate(
        [params["b2"], jnp.full((1, NOUT_PAD - nout), -1e9, jnp.float32)], axis=1)

    Lb = L.astype(jnp.bfloat16)   # bf16 matmul operand, f32 accumulation

    def const_spec(a):
        return pl.BlockSpec(a.shape, lambda g: (0,) * a.ndim)

    out = pl.pallas_call(
        chebnet_kernel,
        out_shape=jax.ShapeDtypeStruct((B, 8, NOUT_PAD), jnp.float32),
        grid_spec=pltpu.PrefetchScalarGridSpec(
            num_scalar_prefetch=0,
            grid=(B,),
            in_specs=[
                pl.BlockSpec((None, n, n), lambda g: (g, 0, 0)),      # L_hat[g]
                pl.BlockSpec((None, n, ninp), lambda g: (g, 0, 0)),   # x[g]
                const_spec(wc1), const_spec(bc1),
                const_spec(wc2), const_spec(bc2),
                const_spec(wc3), const_spec(bc3),
                const_spec(w1f), const_spec(b1f),
                const_spec(w2p), const_spec(b2p),
            ],
            out_specs=pl.BlockSpec((None, 8, NOUT_PAD), lambda g: (g, 0, 0)),
        ),
        compiler_params=pltpu.CompilerParams(
            dimension_semantics=("parallel",)),      # graphs split across TCs
    )(Lb, x, wc1, bc1, wc2, bc2, wc3, bc3, w1f, b1f, w2p, b2p)

    return out[:, 0, :nout]


# --------------------------- Pure-JAX reference -----------------------------

def _ref_cheb(L, x, w, b):
    t_prev = x
    acc = jnp.einsum("bnc,co->bno", t_prev, w[0])
    t_cur = jnp.einsum("bij,bjc->bic", L, x)
    acc = acc + jnp.einsum("bnc,co->bno", t_cur, w[1])
    for k in range(2, K_CHEB):
        t_next = 2.0 * jnp.einsum("bij,bjc->bic", L, t_cur) - t_prev
        acc = acc + jnp.einsum("bnc,co->bno", t_next, w[k])
        t_prev, t_cur = t_cur, t_next
    return jnp.maximum(acc + b, 0.0)


def ref_forward(L, x, p):
    h = _ref_cheb(L, x, p["Wc1"], p["bc1"])
    h = _ref_cheb(L, h, p["Wc2"], p["bc2"])
    h = _ref_cheb(L, h, p["Wc3"], p["bc3"])
    pooled = h.mean(axis=1)                                   # (B, 128)
    xbn = (pooled - p["bn_mean"]) * jax.lax.rsqrt(p["bn_var"] + 1e-5)
    xbn = xbn * p["bn_gamma"] + p["bn_beta"]
    hd = jnp.maximum(xbn @ p["W1"] + p["b1"], 0.0)
    logits = hd @ p["W2"] + p["b2"]
    return jax.nn.log_softmax(logits, axis=1)


# ---------------------------------- Main ------------------------------------

if __name__ == "__main__":
    key = jax.random.PRNGKey(0)
    keys = jax.random.split(key, 20)

    B = 2               # graphs per batch
    n = 32              # nodes per graph
    NINP = 2            # MNISTSuperpixels intensity + degree (adddegree=True)
    NOUT = 10           # MNIST classes

    # ---- synthetic batched graph: per-graph scaled Laplacian blocks ----
    L_list, deg_list = [], []
    for g in range(B):
        kg = jax.random.fold_in(keys[0], g)
        r = jax.random.uniform(kg, (n, n))
        a = jnp.triu((r < 0.3).astype(jnp.float32), 1)
        a = a + a.T                                            # symmetric adjacency
        deg = a.sum(axis=1)
        dinv = jnp.where(deg > 0, 1.0 / jnp.sqrt(deg), 0.0)
        lap = jnp.eye(n) - dinv[:, None] * a * dinv[None, :]
        lam = float(np.linalg.eigvalsh(np.asarray(lap)).max())  # data.lmax per graph
        L_list.append((2.0 / lam) * lap - jnp.eye(n))
        deg_list.append(deg)
    L = jnp.stack(L_list).astype(jnp.float32)                  # (B, n, n)

    intensity = jax.random.uniform(keys[1], (B, n, 1), jnp.float32)
    degree_feat = jnp.stack(deg_list)[:, :, None]
    x = jnp.concatenate([intensity, degree_feat], axis=-1)     # (B, n, 2)

    # ---- deterministic parameters (fan-in scaled so activations stay O(1)) ----
    def winit(k, shape, scale):
        return scale * jax.random.normal(k, shape, jnp.float32)

    params = dict(
        Wc1=winit(keys[2], (K_CHEB, NINP, 64), 0.5 / np.sqrt(K_CHEB * NINP)),
        bc1=winit(keys[3], (1, 64), 0.05),
        Wc2=winit(keys[4], (K_CHEB, 64, 128), 0.5 / np.sqrt(K_CHEB * 64)),
        bc2=winit(keys[5], (1, 128), 0.05),
        Wc3=winit(keys[6], (K_CHEB, 128, 128), 0.5 / np.sqrt(K_CHEB * 128)),
        bc3=winit(keys[7], (1, 128), 0.05),
        bn_gamma=1.0 + winit(keys[8], (1, 128), 0.1),
        bn_beta=winit(keys[9], (1, 128), 0.1),
        bn_mean=winit(keys[10], (1, 128), 0.1),
        bn_var=1.0 + 0.5 * jax.random.uniform(keys[11], (1, 128), jnp.float32),
        W1=winit(keys[12], (128, 32), 1.0 / np.sqrt(128)),
        b1=winit(keys[13], (1, 32), 0.05),
        W2=winit(keys[14], (32, NOUT), 1.0 / np.sqrt(32)),
        b2=winit(keys[15], (1, NOUT), 0.05),
    )

    out = jax.block_until_ready(chebnet_forward(L, x, params))
    ref = jax.block_until_ready(ref_forward(L, x, params))

    # Tolerance absorbs bf16 matmul inputs (f32 accumulation) vs. f32 reference.
    np.testing.assert_allclose(np.asarray(out), np.asarray(ref),
                               rtol=5e-2, atol=5e-2)

    assert out.shape == (B, NOUT)
    print("KERNEL_OK")
</pallas_src>

<mosaic_0001>
module attributes {stable_mosaic.version = 11 : i64} {
  func.func @chebnet_kernel(%arg0: i32, %arg1: memref<1x32x32xbf16, #tpu.memory_space<vmem>>, %arg2: memref<1x32x2xf32, #tpu.memory_space<vmem>>, %arg3: memref<10x64xbf16, #tpu.memory_space<vmem>>, %arg4: memref<1x64xf32, #tpu.memory_space<vmem>>, %arg5: memref<320x128xbf16, #tpu.memory_space<vmem>>, %arg6: memref<1x128xf32, #tpu.memory_space<vmem>>, %arg7: memref<640x128xbf16, #tpu.memory_space<vmem>>, %arg8: memref<1x128xf32, #tpu.memory_space<vmem>>, %arg9: memref<128x32xf32, #tpu.memory_space<vmem>>, %arg10: memref<1x32xf32, #tpu.memory_space<vmem>>, %arg11: memref<32x128xf32, #tpu.memory_space<vmem>>, %arg12: memref<1x128xf32, #tpu.memory_space<vmem>>, %arg13: memref<1x8x128xf32, #tpu.memory_space<vmem>>) attributes {dimension_semantics = [#tpu.dimension_semantics<parallel>], iteration_bounds = array<i64: 2>, scalar_prefetch = 0 : i64, scratch_operands = 0 : i64, tpu.core_type = #tpu.core_type<tc>, window_params = [{transform_indices = @transform_0, window_bounds = array<i64: 1, 32, 32>}, {transform_indices = @transform_1, window_bounds = array<i64: 1, 32, 2>}, {pipeline_mode = #tpu.pipeline_mode<synchronous>, transform_indices = @transform_2, window_bounds = array<i64: 10, 64>}, {pipeline_mode = #tpu.pipeline_mode<synchronous>, transform_indices = @transform_3, window_bounds = array<i64: 1, 64>}, {pipeline_mode = #tpu.pipeline_mode<synchronous>, transform_indices = @transform_4, window_bounds = array<i64: 320, 128>}, {pipeline_mode = #tpu.pipeline_mode<synchronous>, transform_indices = @transform_5, window_bounds = array<i64: 1, 128>}, {pipeline_mode = #tpu.pipeline_mode<synchronous>, transform_indices = @transform_6, window_bounds = array<i64: 640, 128>}, {pipeline_mode = #tpu.pipeline_mode<synchronous>, transform_indices = @transform_7, window_bounds = array<i64: 1, 128>}, {pipeline_mode = #tpu.pipeline_mode<synchronous>, transform_indices = @transform_8, window_bounds = array<i64: 128, 32>}, {pipeline_mode = #tpu.pipeline_mode<synchronous>, transform_indices = @transform_9, window_bounds = array<i64: 1, 32>}, {pipeline_mode = #tpu.pipeline_mode<synchronous>, transform_indices = @transform_10, window_bounds = array<i64: 32, 128>}, {pipeline_mode = #tpu.pipeline_mode<synchronous>, transform_indices = @transform_11, window_bounds = array<i64: 1, 128>}, {transform_indices = @transform_12, window_bounds = array<i64: 1, 8, 128>}]} {
    %c0 = arith.constant 0 : index
    %c0_0 = arith.constant 0 : index
    %c0_1 = arith.constant 0 : index
    %0 = vector.load %arg1[%c0, %c0_0, %c0_1] : memref<1x32x32xbf16, #tpu.memory_space<vmem>>, vector<1x32x32xbf16>
    %1 = vector.shape_cast %0 : vector<1x32x32xbf16> to vector<32x32xbf16>
    %c0_2 = arith.constant 0 : index
    %c0_3 = arith.constant 0 : index
    %c0_4 = arith.constant 0 : index
    %2 = vector.load %arg2[%c0_2, %c0_3, %c0_4] : memref<1x32x2xf32, #tpu.memory_space<vmem>>, vector<1x32x2xf32>
    %3 = vector.shape_cast %2 : vector<1x32x2xf32> to vector<32x2xf32>
    %c0_5 = arith.constant 0 : index
    %c0_6 = arith.constant 0 : index
    %4 = vector.load %arg3[%c0_5, %c0_6] : memref<10x64xbf16, #tpu.memory_space<vmem>>, vector<10x64xbf16>
    %c0_7 = arith.constant 0 : index
    %c0_8 = arith.constant 0 : index
    %5 = vector.load %arg4[%c0_7, %c0_8] : memref<1x64xf32, #tpu.memory_space<vmem>>, vector<1x64xf32>
    %6 = arith.truncf %3 : vector<32x2xf32> to vector<32x2xbf16>
    %cst = arith.constant dense<0.000000e+00> : vector<32x2xf32>
    %7 = tpu.matmul %1, %6, %cst {dimension_numbers = #tpu.dot_dimension_numbers<[1], [0], [0], [1], [0, 0, 1, 1], [], []>} : vector<32x32xbf16>, vector<32x2xbf16>, vector<32x2xf32> -> vector<32x2xf32>
    %8 = arith.truncf %7 : vector<32x2xf32> to vector<32x2xbf16>
    %cst_9 = arith.constant dense<0.000000e+00> : vector<32x2xf32>
    %9 = tpu.matmul %1, %8, %cst_9 {dimension_numbers = #tpu.dot_dimension_numbers<[1], [0], [0], [1], [0, 0, 1, 1], [], []>} : vector<32x32xbf16>, vector<32x2xbf16>, vector<32x2xf32> -> vector<32x2xf32>
    %cst_10 = arith.constant 2.000000e+00 : f32
    %10 = vector.broadcast %cst_10 : f32 to vector<32x2xf32>
    %11 = arith.mulf %10, %9 : vector<32x2xf32>
    %12 = arith.subf %11, %3 : vector<32x2xf32>
    %13 = arith.truncf %12 : vector<32x2xf32> to vector<32x2xbf16>
    %cst_11 = arith.constant dense<0.000000e+00> : vector<32x2xf32>
    %14 = tpu.matmul %1, %13, %cst_11 {dimension_numbers = #tpu.dot_dimension_numbers<[1], [0], [0], [1], [0, 0, 1, 1], [], []>} : vector<32x32xbf16>, vector<32x2xbf16>, vector<32x2xf32> -> vector<32x2xf32>
    %cst_12 = arith.constant 2.000000e+00 : f32
    %15 = vector.broadcast %cst_12 : f32 to vector<32x2xf32>
    %16 = arith.mulf %15, %14 : vector<32x2xf32>
    %17 = arith.subf %16, %7 : vector<32x2xf32>
    %18 = arith.truncf %17 : vector<32x2xf32> to vector<32x2xbf16>
    %cst_13 = arith.constant dense<0.000000e+00> : vector<32x2xf32>
    %19 = tpu.matmul %1, %18, %cst_13 {dimension_numbers = #tpu.dot_dimension_numbers<[1], [0], [0], [1], [0, 0, 1, 1], [], []>} : vector<32x32xbf16>, vector<32x2xbf16>, vector<32x2xf32> -> vector<32x2xf32>
    %cst_14 = arith.constant 2.000000e+00 : f32
    %20 = vector.broadcast %cst_14 : f32 to vector<32x2xf32>
    %21 = arith.mulf %20, %19 : vector<32x2xf32>
    %22 = arith.subf %21, %12 : vector<32x2xf32>
    %23 = tpu.concatenate %3, %7, %12, %17, %22 in 1 : vector<32x2xf32>, vector<32x2xf32>, vector<32x2xf32>, vector<32x2xf32>, vector<32x2xf32> -> vector<32x10xf32>
    %24 = arith.truncf %23 : vector<32x10xf32> to vector<32x10xbf16>
    %cst_15 = arith.constant dense<0.000000e+00> : vector<32x64xf32>
    %25 = tpu.matmul %24, %4, %cst_15 {dimension_numbers = #tpu.dot_dimension_numbers<[1], [0], [0], [1], [0, 0, 1, 1], [], []>} : vector<32x10xbf16>, vector<10x64xbf16>, vector<32x64xf32> -> vector<32x64xf32>
    %26 = vector.broadcast %5 : vector<1x64xf32> to vector<32x64xf32>
    %27 = arith.addf %25, %26 : vector<32x64xf32>
    %cst_16 = arith.constant 0.000000e+00 : f32
    %28 = vector.broadcast %cst_16 : f32 to vector<32x64xf32>
    %29 = arith.maximumf %27, %28 : vector<32x64xf32>
    %c0_17 = arith.constant 0 : index
    %c0_18 = arith.constant 0 : index
    %30 = vector.load %arg5[%c0_17, %c0_18] : memref<320x128xbf16, #tpu.memory_space<vmem>>, vector<320x128xbf16>
    %c0_19 = arith.constant 0 : index
    %c0_20 = arith.constant 0 : index
    %31 = vector.load %arg6[%c0_19, %c0_20] : memref<1x128xf32, #tpu.memory_space<vmem>>, vector<1x128xf32>
    %32 = arith.truncf %29 : vector<32x64xf32> to vector<32x64xbf16>
    %cst_21 = arith.constant dense<0.000000e+00> : vector<32x64xf32>
    %33 = tpu.matmul %1, %32, %cst_21 {dimension_numbers = #tpu.dot_dimension_numbers<[1], [0], [0], [1], [0, 0, 1, 1], [], []>} : vector<32x32xbf16>, vector<32x64xbf16>, vector<32x64xf32> -> vector<32x64xf32>
    %34 = arith.truncf %33 : vector<32x64xf32> to vector<32x64xbf16>
    %cst_22 = arith.constant dense<0.000000e+00> : vector<32x64xf32>
    %35 = tpu.matmul %1, %34, %cst_22 {dimension_numbers = #tpu.dot_dimension_numbers<[1], [0], [0], [1], [0, 0, 1, 1], [], []>} : vector<32x32xbf16>, vector<32x64xbf16>, vector<32x64xf32> -> vector<32x64xf32>
    %cst_23 = arith.constant 2.000000e+00 : f32
    %36 = vector.broadcast %cst_23 : f32 to vector<32x64xf32>
    %37 = arith.mulf %36, %35 : vector<32x64xf32>
    %38 = arith.subf %37, %29 : vector<32x64xf32>
    %39 = arith.truncf %38 : vector<32x64xf32> to vector<32x64xbf16>
    %cst_24 = arith.constant dense<0.000000e+00> : vector<32x64xf32>
    %40 = tpu.matmul %1, %39, %cst_24 {dimension_numbers = #tpu.dot_dimension_numbers<[1], [0], [0], [1], [0, 0, 1, 1], [], []>} : vector<32x32xbf16>, vector<32x64xbf16>, vector<32x64xf32> -> vector<32x64xf32>
    %cst_25 = arith.constant 2.000000e+00 : f32
    %41 = vector.broadcast %cst_25 : f32 to vector<32x64xf32>
    %42 = arith.mulf %41, %40 : vector<32x64xf32>
    %43 = arith.subf %42, %33 : vector<32x64xf32>
    %44 = arith.truncf %43 : vector<32x64xf32> to vector<32x64xbf16>
    %cst_26 = arith.constant dense<0.000000e+00> : vector<32x64xf32>
    %45 = tpu.matmul %1, %44, %cst_26 {dimension_numbers = #tpu.dot_dimension_numbers<[1], [0], [0], [1], [0, 0, 1, 1], [], []>} : vector<32x32xbf16>, vector<32x64xbf16>, vector<32x64xf32> -> vector<32x64xf32>
    %cst_27 = arith.constant 2.000000e+00 : f32
    %46 = vector.broadcast %cst_27 : f32 to vector<32x64xf32>
    %47 = arith.mulf %46, %45 : vector<32x64xf32>
    %48 = arith.subf %47, %38 : vector<32x64xf32>
    %49 = tpu.concatenate %29, %33, %38, %43, %48 in 1 : vector<32x64xf32>, vector<32x64xf32>, vector<32x64xf32>, vector<32x64xf32>, vector<32x64xf32> -> vector<32x320xf32>
    %50 = arith.truncf %49 : vector<32x320xf32> to vector<32x320xbf16>
    %cst_28 = arith.constant dense<0.000000e+00> : vector<32x128xf32>
    %51 = tpu.matmul %50, %30, %cst_28 {dimension_numbers = #tpu.dot_dimension_numbers<[1], [0], [0], [1], [0, 0, 1, 1], [], []>} : vector<32x320xbf16>, vector<320x128xbf16>, vector<32x128xf32> -> vector<32x128xf32>
    %52 = vector.broadcast %31 : vector<1x128xf32> to vector<32x128xf32>
    %53 = arith.addf %51, %52 : vector<32x128xf32>
    %cst_29 = arith.constant 0.000000e+00 : f32
    %54 = vector.broadcast %cst_29 : f32 to vector<32x128xf32>
    %55 = arith.maximumf %53, %54 : vector<32x128xf32>
    %c0_30 = arith.constant 0 : index
    %c0_31 = arith.constant 0 : index
    %56 = vector.load %arg7[%c0_30, %c0_31] : memref<640x128xbf16, #tpu.memory_space<vmem>>, vector<640x128xbf16>
    %c0_32 = arith.constant 0 : index
    %c0_33 = arith.constant 0 : index
    %57 = vector.load %arg8[%c0_32, %c0_33] : memref<1x128xf32, #tpu.memory_space<vmem>>, vector<1x128xf32>
    %58 = arith.truncf %55 : vector<32x128xf32> to vector<32x128xbf16>
    %cst_34 = arith.constant dense<0.000000e+00> : vector<32x128xf32>
    %59 = tpu.matmul %1, %58, %cst_34 {dimension_numbers = #tpu.dot_dimension_numbers<[1], [0], [0], [1], [0, 0, 1, 1], [], []>} : vector<32x32xbf16>, vector<32x128xbf16>, vector<32x128xf32> -> vector<32x128xf32>
    %60 = arith.truncf %59 : vector<32x128xf32> to vector<32x128xbf16>
    %cst_35 = arith.constant dense<0.000000e+00> : vector<32x128xf32>
    %61 = tpu.matmul %1, %60, %cst_35 {dimension_numbers = #tpu.dot_dimension_numbers<[1], [0], [0], [1], [0, 0, 1, 1], [], []>} : vector<32x32xbf16>, vector<32x128xbf16>, vector<32x128xf32> -> vector<32x128xf32>
    %cst_36 = arith.constant 2.000000e+00 : f32
    %62 = vector.broadcast %cst_36 : f32 to vector<32x128xf32>
    %63 = arith.mulf %62, %61 : vector<32x128xf32>
    %64 = arith.subf %63, %55 : vector<32x128xf32>
    %65 = arith.truncf %64 : vector<32x128xf32> to vector<32x128xbf16>
    %cst_37 = arith.constant dense<0.000000e+00> : vector<32x128xf32>
    %66 = tpu.matmul %1, %65, %cst_37 {dimension_numbers = #tpu.dot_dimension_numbers<[1], [0], [0], [1], [0, 0, 1, 1], [], []>} : vector<32x32xbf16>, vector<32x128xbf16>, vector<32x128xf32> -> vector<32x128xf32>
    %cst_38 = arith.constant 2.000000e+00 : f32
    %67 = vector.broadcast %cst_38 : f32 to vector<32x128xf32>
    %68 = arith.mulf %67, %66 : vector<32x128xf32>
    %69 = arith.subf %68, %59 : vector<32x128xf32>
    %70 = arith.truncf %69 : vector<32x128xf32> to vector<32x128xbf16>
    %cst_39 = arith.constant dense<0.000000e+00> : vector<32x128xf32>
    %71 = tpu.matmul %1, %70, %cst_39 {dimension_numbers = #tpu.dot_dimension_numbers<[1], [0], [0], [1], [0, 0, 1, 1], [], []>} : vector<32x32xbf16>, vector<32x128xbf16>, vector<32x128xf32> -> vector<32x128xf32>
    %cst_40 = arith.constant 2.000000e+00 : f32
    %72 = vector.broadcast %cst_40 : f32 to vector<32x128xf32>
    %73 = arith.mulf %72, %71 : vector<32x128xf32>
    %74 = arith.subf %73, %64 : vector<32x128xf32>
    %75 = tpu.concatenate %55, %59, %64, %69, %74 in 1 : vector<32x128xf32>, vector<32x128xf32>, vector<32x128xf32>, vector<32x128xf32>, vector<32x128xf32> -> vector<32x640xf32>
    %76 = arith.truncf %75 : vector<32x640xf32> to vector<32x640xbf16>
    %cst_41 = arith.constant dense<0.000000e+00> : vector<32x128xf32>
    %77 = tpu.matmul %76, %56, %cst_41 {dimension_numbers = #tpu.dot_dimension_numbers<[1], [0], [0], [1], [0, 0, 1, 1], [], []>} : vector<32x640xbf16>, vector<640x128xbf16>, vector<32x128xf32> -> vector<32x128xf32>
    %78 = vector.broadcast %57 : vector<1x128xf32> to vector<32x128xf32>
    %79 = arith.addf %77, %78 : vector<32x128xf32>
    %cst_42 = arith.constant 0.000000e+00 : f32
    %80 = vector.broadcast %cst_42 : f32 to vector<32x128xf32>
    %81 = arith.maximumf %79, %80 : vector<32x128xf32>
    %cst_43 = arith.constant dense<0.000000e+00> : vector<128xf32>
    %82 = vector.multi_reduction <add>, %81, %cst_43 [0] : vector<32x128xf32> to vector<128xf32>
    %83 = vector.shape_cast %82 : vector<128xf32> to vector<1x128xf32>
    %cst_44 = arith.constant 3.200000e+01 : f32
    %84 = vector.broadcast %cst_44 : f32 to vector<1x128xf32>
    %85 = arith.divf %83, %84 : vector<1x128xf32>
    %c0_45 = arith.constant 0 : index
    %c0_46 = arith.constant 0 : index
    %86 = vector.load %arg9[%c0_45, %c0_46] : memref<128x32xf32, #tpu.memory_space<vmem>>, vector<128x32xf32>
    %cst_47 = arith.constant dense<0.000000e+00> : vector<1x32xf32>
    %87 = tpu.matmul %85, %86, %cst_47 {dimension_numbers = #tpu.dot_dimension_numbers<[1], [0], [0], [1], [0, 0, 1, 1], [], []>} : vector<1x128xf32>, vector<128x32xf32>, vector<1x32xf32> -> vector<1x32xf32>
    %c0_48 = arith.constant 0 : index
    %c0_49 = arith.constant 0 : index
    %88 = vector.load %arg10[%c0_48, %c0_49] : memref<1x32xf32, #tpu.memory_space<vmem>>, vector<1x32xf32>
    %89 = arith.addf %87, %88 : vector<1x32xf32>
    %cst_50 = arith.constant 0.000000e+00 : f32
    %90 = vector.broadcast %cst_50 : f32 to vector<1x32xf32>
    %91 = arith.maximumf %89, %90 : vector<1x32xf32>
    %c0_51 = arith.constant 0 : index
    %c0_52 = arith.constant 0 : index
    %92 = vector.load %arg11[%c0_51, %c0_52] : memref<32x128xf32, #tpu.memory_space<vmem>>, vector<32x128xf32>
    %cst_53 = arith.constant dense<0.000000e+00> : vector<1x128xf32>
    %93 = tpu.matmul %91, %92, %cst_53 {dimension_numbers = #tpu.dot_dimension_numbers<[1], [0], [0], [1], [0, 0, 1, 1], [], []>} : vector<1x32xf32>, vector<32x128xf32>, vector<1x128xf32> -> vector<1x128xf32>
    %c0_54 = arith.constant 0 : index
    %c0_55 = arith.constant 0 : index
    %94 = vector.load %arg12[%c0_54, %c0_55] : memref<1x128xf32, #tpu.memory_space<vmem>>, vector<1x128xf32>
    %95 = arith.addf %93, %94 : vector<1x128xf32>
    %cst_56 = arith.constant dense<0xFF800000> : vector<1xf32>
    %96 = vector.multi_reduction <maximumf>, %95, %cst_56 [1] : vector<1x128xf32> to vector<1xf32>
    %97 = vector.shape_cast %96 : vector<1xf32> to vector<1x1xf32>
    %98 = vector.broadcast %97 : vector<1x1xf32> to vector<1x128xf32>
    %99 = arith.subf %95, %98 : vector<1x128xf32>
    %100 = math.exp %99 : vector<1x128xf32>
    %cst_57 = arith.constant dense<0.000000e+00> : vector<1xf32>
    %101 = vector.multi_reduction <add>, %100, %cst_57 [1] : vector<1x128xf32> to vector<1xf32>
    %102 = vector.shape_cast %101 : vector<1xf32> to vector<1x1xf32>
    %103 = math.log %102 : vector<1x1xf32>
    %104 = vector.broadcast %103 : vector<1x1xf32> to vector<1x128xf32>
    %105 = arith.subf %99, %104 : vector<1x128xf32>
    %106 = vector.shape_cast %105 : vector<1x128xf32> to vector<1x128xf32>
    %107 = vector.broadcast %106 : vector<1x128xf32> to vector<8x128xf32>
    %c0_58 = arith.constant 0 : index
    %c0_59 = arith.constant 0 : index
    %c0_60 = arith.constant 0 : index
    %108 = vector.load %arg13[%c0_58, %c0_59, %c0_60] : memref<1x8x128xf32, #tpu.memory_space<vmem>>, vector<1x8x128xf32>
    %109 = vector.shape_cast %108 : vector<1x8x128xf32> to vector<8x128xf32>
    %110 = vector.shape_cast %107 : vector<8x128xf32> to vector<1x8x128xf32>
    tpu.vector_store %arg13[%c0_58, %c0_59, %c0_60], %110 {strides = array<i32>} : memref<1x8x128xf32, #tpu.memory_space<vmem>>, vector<1x8x128xf32>,
    return
  }
  func.func @transform_0(%arg0: i32) -> (i32, i32, i32) {
    %c0_i32 = arith.constant 0 : i32
    %c0_i32_0 = arith.constant 0 : i32
    %c0_i32_1 = arith.constant 0 : i32
    return %arg0, %c0_i32, %c0_i32_0 : i32, i32, i32
  }
  func.func @transform_1(%arg0: i32) -> (i32, i32, i32) {
    %c0_i32 = arith.constant 0 : i32
    %c0_i32_0 = arith.constant 0 : i32
    %c0_i32_1 = arith.constant 0 : i32
    return %arg0, %c0_i32, %c0_i32_0 : i32, i32, i32
  }
  func.func @transform_2(%arg0: i32) -> (i32, i32) {
    %c0_i32 = arith.constant 0 : i32
    %c0_i32_0 = arith.constant 0 : i32
    %c0_i32_1 = arith.constant 0 : i32
    return %c0_i32, %c0_i32_0 : i32, i32
  }
  func.func @transform_3(%arg0: i32) -> (i32, i32) {
    %c0_i32 = arith.constant 0 : i32
    %c0_i32_0 = arith.constant 0 : i32
    %c0_i32_1 = arith.constant 0 : i32
    return %c0_i32, %c0_i32_0 : i32, i32
  }
  func.func @transform_4(%arg0: i32) -> (i32, i32) {
    %c0_i32 = arith.constant 0 : i32
    %c0_i32_0 = arith.constant 0 : i32
    %c0_i32_1 = arith.constant 0 : i32
    return %c0_i32, %c0_i32_0 : i32, i32
  }
  func.func @transform_5(%arg0: i32) -> (i32, i32) {
    %c0_i32 = arith.constant 0 : i32
    %c0_i32_0 = arith.constant 0 : i32
    %c0_i32_1 = arith.constant 0 : i32
    return %c0_i32, %c0_i32_0 : i32, i32
  }
  func.func @transform_6(%arg0: i32) -> (i32, i32) {
    %c0_i32 = arith.constant 0 : i32
    %c0_i32_0 = arith.constant 0 : i32
    %c0_i32_1 = arith.constant 0 : i32
    return %c0_i32, %c0_i32_0 : i32, i32
  }
  func.func @transform_7(%arg0: i32) -> (i32, i32) {
    %c0_i32 = arith.constant 0 : i32
    %c0_i32_0 = arith.constant 0 : i32
    %c0_i32_1 = arith.constant 0 : i32
    return %c0_i32, %c0_i32_0 : i32, i32
  }
  func.func @transform_8(%arg0: i32) -> (i32, i32) {
    %c0_i32 = arith.constant 0 : i32
    %c0_i32_0 = arith.constant 0 : i32
    %c0_i32_1 = arith.constant 0 : i32
    return %c0_i32, %c0_i32_0 : i32, i32
  }
  func.func @transform_9(%arg0: i32) -> (i32, i32) {
    %c0_i32 = arith.constant 0 : i32
    %c0_i32_0 = arith.constant 0 : i32
    %c0_i32_1 = arith.constant 0 : i32
    return %c0_i32, %c0_i32_0 : i32, i32
  }
  func.func @transform_10(%arg0: i32) -> (i32, i32) {
    %c0_i32 = arith.constant 0 : i32
    %c0_i32_0 = arith.constant 0 : i32
    %c0_i32_1 = arith.constant 0 : i32
    return %c0_i32, %c0_i32_0 : i32, i32
  }
  func.func @transform_11(%arg0: i32) -> (i32, i32) {
    %c0_i32 = arith.constant 0 : i32
    %c0_i32_0 = arith.constant 0 : i32
    %c0_i32_1 = arith.constant 0 : i32
    return %c0_i32, %c0_i32_0 : i32, i32
  }
  func.func @transform_12(%arg0: i32) -> (i32, i32, i32) {
    %c0_i32 = arith.constant 0 : i32
    %c0_i32_0 = arith.constant 0 : i32
    %c0_i32_1 = arith.constant 0 : i32
    return %arg0, %c0_i32, %c0_i32_0 : i32, i32, i32
  }
}

</mosaic_0001>

<bundles_post_ra>
// kernel: tpu_custom_call.1
= control target key start
LH: loop header
LB: loop body
LE: loop exit
PB: predicated region body
PF: predicated region fallthrough
CT: control target
= control target key end

     0   :  { %s3092_s0 = inlined_call_operand.vmem [shape: bf16[2,32,32], index: 0, kind: input, shape index: {}]   ;;  %s3093_s1 = inlined_call_operand.vmem [shape: f32[2,32,2], index: 1, kind: input, shape index: {}]   ;;  %s3094_s2 = inlined_call_operand.hbm [shape: bf16[10,64], index: 2, kind: input, shape index: {}]   ;;  %s3095_s3 = inlined_call_operand.vmem [shape: f32[1,64], index: 3, kind: input, shape index: {}]   ;;  %s3096_s4 = inlined_call_operand.vmem [shape: bf16[320,128], index: 4, kind: input, shape index: {}]   ;;  %s3097_s5 = inlined_call_operand.vmem [shape: f32[1,128], index: 5, kind: input, shape index: {}]   ;;  %s3098_s6 = inlined_call_operand.hbm [shape: bf16[640,128], index: 6, kind: input, shape index: {}]   ;;  %s3099_s7 = inlined_call_operand.vmem [shape: f32[1,128], index: 7, kind: input, shape index: {}]   ;;  %s3100_s8 = inlined_call_operand.vmem [shape: f32[128,32], index: 8, kind: input, shape index: {}]   ;;  %s3101_s9 = inlined_call_operand.vmem [shape: f32[1,32], index: 9, kind: input, shape index: {}]   ;;  %s3102_s10 = inlined_call_operand.hbm [shape: f32[32,128], index: 10, kind: input, shape index: {}]   ;;  %s3103_s11 = inlined_call_operand.vmem [shape: f32[1,128], index: 11, kind: input, shape index: {}]   ;;  %s3104_s12 = inlined_call_operand.hbm [shape: f32[2,8,128], index: 12, kind: output, shape index: {}]  }
   0x1   :  { %3110 = sst [smem:[#allocation17_spill]] %s3094_s2 }
   0x2   :  { %3111 = sst [smem:[#allocation18_spill]] %s3098_s6 }
   0x3   :  { %17 = vsyncpa [#allocation3], 0 }
   0x4   :  { %18 = vsyncpa [#allocation6], 0 }
   0x5   :  { %19 = vsyncpa [#allocation4], 0 }
   0x6   :  { %21 = vsyncpa [#allocation4 + $0x1], 0  ;;  %s2638_s21 = smov 0   ;;  %s2640_s22 = smov 0  }
   0x7   :  { %s2642_s23 = smov 0   ;;  %s2644_s24 = smov 0  }
   0x8 LB: > { %3112 = sst [smem:[#allocation12_spill]] %s2546_s21  ;;  %s2659_s25 = sadd.s32 4294967295, %s2558_s24   ;;  %s2558_s24 = sphi %s2644_s24, %s3125_s24   ;;  %s2554_s23 = sphi %s2642_s23, %s3127_s23   ;;  %s2550_s22 = sphi %s2640_s22, %s3129_s22   ;;  %s2546_s21 = sphi %s2638_s21, %s3128_s21  }
   0x9   : > { %3113 = sst [smem:[#allocation13_spill]] %s2554_s23  ;;  %s1882_s26 = sadd.s32 4294967294, %s2558_s24  }
   0xa   : > { %s2663_s27 = sadd.s32 1, %s2558_s24   ;;  %s296_s28 = sadd.s32 1, %s2554_s23 }
   0xb   : > { %3114 = sst [smem:[#allocation14_spill]] %s2663_s27  ;;  %s293_s29 = ssub.s32 %s2558_s24, %s2663_s27 }
   0xc   : > { %p306_p0 = scmp.ne.s32.totalorder %s2554_s23, %s2550_s22  ;;  %p294_p1 = scmp.eq.s32.totalorder %s293_s29, 0 }
   0xd   : > { %p307_p2 = scmp.eq.s32.totalorder %s2659_s25, 1  ;;  %p312_p3 = scmp.ne.s32.totalorder %s2550_s22, %s2546_s21 }
   0xe   : > { %p313_p4 = scmp.eq.s32.totalorder %s1882_s26, 1  ;;  %p1883_p7 = scmp.ge.s32.totalorder %s2558_s24, 1 }
   0xf   : > { %s2674_s30 = scalar_select %p294_p1, %s2554_s23, %s296_s28  }
  0x10   : > { %p2676_p5 = por %p307_p2, %p306_p0  ;;  %p2680_p6 = por %p313_p4, %p312_p3 }
  0x11   : > { %3115 = sst [smem:[#allocation15_spill]] %s2674_s30  ;;  %p320_p8 = scmp.lt.s32.totalorder %s2558_s24, 3 }
  0x12   : > { %s3117_s14 = scalar_select %p2680_p6, 1, 0 }
  0x13   : > { %p2277_p9 = scmp.eq.s32.totalorder %s2659_s25, 0  ;;  %p2687_p10 = pnand %p1883_p7, %p320_p8 }
  0x14   : > { %3118 = sst [smem:[#allocation16_spill]] %s3117_s14  ;;  %s2560_s29 = smov [#allocation5]  }
  0x15   : > { %s3120_s6 = sld [smem:[#allocation18_spill]]  ;;  %p2263_p11 = pneg %p2687_p10 }
  0x16   : > { %s3121_s2 = sld [smem:[#allocation17_spill]]  ;;  %s356_s30 = sshll.u32 %s2560_s29, 4  ;;  %s357_s30 = int_to_ptr.vmem [resolvable:$true] %s356_s30 }
  0x17   : > { %p2701_p12 = pnand %p2277_p9, %p2263_p11  ;;  %s2561_s16 = smov 64  }
  0x18   : > { %s2562_s17 = smov 4   ;;  %s2564_s27 = smov [#allocation7]  }
  0x19   : > { %s379_s14 = sshll.u32 %s2564_s27, 4  ;;  %s2565_s29 = smov 128   ;;  %s380_s14 = int_to_ptr.vmem [resolvable:$true] %s379_s14 }
  0x1a   : > { %s2566_s21 = smov 8  }
  0x1b   : > { %s354_s18 = sshll.u32 %s3120_s6, 4  ;;  %s2563_s6 = smov [#allocation2]   ;;  %s355_s18 = int_to_ptr.hbm [resolvable:$true] %s354_s18 }
  0x1c   : > { %s331_s26 = sshll.u32 %s3121_s2, 4  ;;  %s333_s23 = sshll.u32 %s2563_s6, 4  ;;  %s332_s26 = int_to_ptr.hbm [resolvable:$true] %s331_s26  ;;  %s334_s23 = int_to_ptr.vmem [resolvable:$true] %s333_s23 }
  0x1d   : > { %2269 = dma.hbm_to_vmem [thread:$0]  (!%p2701_p12), %s355_s18, 5120, %s357_s30, [#allocation6], %s2561_s16, %s2561_s16, %s2562_s17  }
  0x1e   : > { %s377_s2 = sshll.u32 %s3102_s10, 4  ;;  %414 = sbr.rel (%p2687_p10) target bundleno = 3102 (0xc1e), region = 68  ;;  %s378_s2 = int_to_ptr.hbm [resolvable:$true] %s377_s2 }
  0x1f   : > { %2266 = dma.hbm_to_vmem [thread:$0]  (!%p2701_p12), %s332_s26, 128, %s334_s23, [#allocation3], %s2561_s16, %s2561_s16, %s2562_s17  }
  0x20   : > { %2272 = dma.hbm_to_vmem [thread:$0]  (!%p2701_p12), %s378_s2, 512, %s380_s14, [#allocation6], %s2565_s29, %s2565_s29, %s2566_s21  }
  0x23   : > { %2533 = dma.done.wait (%p2277_p9), [#allocation3], 128  }
  0x24   : > { %2535 = vsyncadd (%p2277_p9), [#allocation3], 4294967168 }
  0x25   : > { %2537 = dma.done.wait (%p2277_p9), [#allocation6], 5632  }
  0x26   : > { %2539 = vsyncadd (%p2277_p9), [#allocation6], 4294961664  ;;  %p472_p13 = scmp.lt.s32.totalorder %s2659_s25, 1  ;;  %vm506_vm0 = vcmask 261120   ;;  %s2567_s26 = smov 2   ;;  %vm720_vm1 = vcmask 1044480  }
  0x27   : > { %s2568_s28 = smov 4   ;;  %s2569_s16 = smov 6   ;;  %v1915_v62 = vld [vmem:[#allocation2] sm:$0xf]  ;;  %v2186_v63 = vld [vmem:[#allocation2] sm:$0x10] }
  0x28   : > { %s473_s6 = scalar_select %p472_p13, %s2659_s25, 1  ;;  %vm683_vm2 = vcmask 15360   ;;  %vm693_vm3 = vcmask 48128   ;;  %vm688_vm4 = vcmask 31744   ;;  %vm698_vm5 = vcmask 64512  }
  0x29   : > { %s2570_s17 = smov 8   ;;  %vm713_vm6 = vcmask 80896   ;;  %s2571_s29 = smov 64   ;;  %vm928_vm7 = vcmask 523264   ;;  %vm1749_vm9 = vcmask 1040384  }
  0x2a   : > { %s2183_s2 = sshll.u32 %s473_s6, 5  ;;  %s2182_s30 = sshll.u32 %s473_s6, 4 }
  0x2b   : > { %s481_s27 = scalar_lea.vmem %s3093_s1, %s2183_s2  ;;  %s476_s18 = scalar_lea.vmem %s3092_s0, %s2182_s30 }
  0x2c   : > { %v2729_v0 = vld [vmem:[%s481_s27 + $0x10] sm:$0xff]  ;;  %v2731_v1 = vld [vmem:[%s481_s27 + $0x18] sm:$0xff]  ;;  %v2733_v2 = vld [vmem:[%s481_s27] sm:$0xff]  ;;  %s469_s2 = sand.u32 1, %s2550_s22   ;;  %s2179_s23 = sshll.u32 %s2659_s25, 3 }
  0x2d   : > { %v2735_v3 = vld [vmem:[%s481_s27 + $0x8] sm:$0xff]  ;;  %v495_v4 = vpack.c.bf16 %v2731_v1, %v2729_v0  ;;  %v2744_v6 = vld [vmem:[%s476_s18] sm:$0xff]  ;;  %s1892_s21 = sshll.u32 %s469_s2, 3  ;;  %s1775_s14 = scalar_lea.hbm %s3104_s12, %s2179_s23 }
  0x2e   : > { %v494_v5 = vpack.c.bf16 %v2735_v3, %v2733_v2  ;;  %v2746_v7 = vld [vmem:[%s476_s18 + $0x8] sm:$0xff]  ;;  %s471_s15 = scalar_lea.vmem [#allocation8], %s1892_s21  ;;  %s2508_s19 = scalar_lea.hbm %s3104_s12, 16 }
  0x2f   : > { %2247 = vmatpush.bf16.msra.mxu3 %v495_v4  ;;  %519 = vmatpush.bf16.msra.mxu0 %v495_v4  ;;  %v1916_v4 = vor.u32 %v2186_v63, %v1915_v62  ;;  %s1777_s18 = sshll.u32 %s471_s15, 4  ;;  %s1778_s18 = int_to_ptr.vmem [resolvable:$true] %s1777_s18 }
  0x33   : > { %2248 = vmatpush.bf16.msra.mxu3 %v494_v5  ;;  %520 = vmatpush.bf16.msra.mxu0 %v494_v5  ;;  %v722_v5 = vsel %vm720_vm1, %v1916_v4, 0 }
  0x36   : > { %1906 = vmatmul.msk.bf16.vlgmr.msra.gmra.mxu3 %vm506_vm0, %v2746_v7  ;;  %1905 = vmatmul.msk.bf16.vlgmr.msra.gmra.mxu0 %vm506_vm0, %v2744_v6 }
  0x37   : > { %731 = vmatpush.bf16.msrb.mxu0 %v722_v5  ;;  %v2194_v5 = vld [vmem:[%s3096_s4 + $0x38] sm:$0xff] }
  0xb3   : > { %v522_v8 = vpop.f32.mrf.mxu0 }
  0xb9   : > { %v527_v9 = vpop.f32.mrf.mxu3 }
  0xbb   : > { %v524_v10 = vpop.f32.mrf.mxu0 }
  0xbc   : > { %v2329_v11 = vpack.i.bf16 %v524_v10, %v522_v8  ;;  %v532_v15 = vpack.c.bf16 %v524_v10, %v522_v8 }
  0xbe   : > { %2330 = vrot.lane.b32.xlu0 %v2329_v11, %s2567_s26 }
  0xc1   : > { %v529_v12 = vpop.f32.mrf.mxu3 }
  0xc2   : > { %v2349_v13 = vpack.i.bf16 %v529_v12, %v527_v9  ;;  %v533_v14 = vpack.c.bf16 %v529_v12, %v527_v9 }
  0xc4   : > { %2350 = vrot.lane.b32.xlu2 %v2349_v13, %s2567_s26  ;;  %540 = vmatpush.bf16.msra.mxu1 %v533_v14  ;;  %s1779_s26 = sshll.u32 %s1775_s14, 4  ;;  %s1780_s26 = int_to_ptr.hbm [resolvable:$true] %s1779_s26 }
  0xc8   : > { %541 = vmatpush.bf16.msra.mxu1 %v532_v15 }
  0xcb   : > { %1907 = vmatmul.msk.bf16.vlgmr.msra.gmra.mxu1 %vm506_vm0, %v2744_v6 }
  0xdb   : > { %1908 = vmatmul.msk.bf16.gmra.mxu1 %vm506_vm0, %v2746_v7 }
 0x148   : > { %v543_v16 = vpop.f32.mrf.mxu1 }
 0x149   : > { %v553_v17 = vmul.f32 2.0, %v543_v16 }
 0x14b   : > { %v557_v20 = vsub.f32 %v553_v17, %v2733_v2 }
 0x150   : > { %v545_v18 = vpop.f32.mrf.mxu1 }
 0x151   : > { %v554_v19 = vmul.f32 2.0, %v545_v18 }
 0x153   : > { %v558_v21 = vsub.f32 %v554_v19, %v2735_v3 }
 0x155   : > { %v2334_v22 = vpack.i.bf16 %v558_v21, %v557_v20  ;;  %v561_v31 = vpack.c.bf16 %v558_v21, %v557_v20 }
 0x157   : > { %2335 = vrot.lane.b32.xlu0 %v2334_v22, %s2568_s28 }
 0x158   : > { %v548_v23 = vpop.f32.mrf.mxu1 }
 0x159   : > { %v555_v24 = vmul.f32 2.0, %v548_v23 }
 0x15b   : > { %v559_v27 = vsub.f32 %v555_v24, %v2729_v0  ;;  %v2351_v24 = vpop.permute.xlu2 %2350 }
 0x160   : > { %v550_v25 = vpop.f32.mrf.mxu1 }
 0x161   : > { %v556_v26 = vmul.f32 2.0, %v550_v25 }
 0x163   : > { %v560_v28 = vsub.f32 %v556_v26, %v2731_v1 }
 0x165   : > { %v2354_v29 = vpack.i.bf16 %v560_v28, %v559_v27  ;;  %v562_v30 = vpack.c.bf16 %v560_v28, %v559_v27 }
 0x167   : > { %2355 = vrot.lane.b32.xlu2 %v2354_v29, %s2568_s28  ;;  %569 = vmatpush.bf16.msra.mxu2 %v562_v30  ;;  %v2353_v30 = vunpack.i.h.bf16 %v2351_v24  ;;  %s1765_s28 = scalar_lea.sflag [#allocation4], %s469_s2 }
 0x16b   : > { %570 = vmatpush.bf16.msra.mxu2 %v561_v31  ;;  %v2352_v31 = vunpack.i.l.bf16 %v2351_v24 }
 0x16e   : > { %1909 = vmatmul.msk.bf16.vlgmr.msra.gmra.mxu2 %vm506_vm0, %v2744_v6 }
 0x17e   : > { %1910 = vmatmul.msk.bf16.gmra.mxu2 %vm506_vm0, %v2746_v7 }
 0x1f1   : > { %v572_v32 = vpop.f32.mrf.mxu2 }
 0x1f2   : > { %v582_v33 = vmul.f32 2.0, %v572_v32 }
 0x1f4   : > { %v586_v36 = vsub.f32 %v582_v33, %v522_v8  ;;  %v2331_v8 = vpop.permute.xlu0 %2330 }
 0x1f5   : > { %v2333_v11 = vunpack.i.h.bf16 %v2331_v8 }
 0x1f7   : > { %v685_v17 = vsel %vm683_vm2, %v2735_v3, %v2333_v11 }
 0x1f9   : > { %v574_v34 = vpop.f32.mrf.mxu2 }
 0x1fa   : > { %v583_v35 = vmul.f32 2.0, %v574_v34 }
 0x1fc   : > { %v587_v37 = vsub.f32 %v583_v35, %v524_v10  ;;  %v2336_v10 = vpop.permute.xlu0 %2335 }
 0x1fd   : > { %v2338_v13 = vunpack.i.h.bf16 %v2336_v10  ;;  %v2337_v14 = vunpack.i.l.bf16 %v2336_v10  ;;  %v2192_v10 = vld [vmem:[%s3096_s4 + $0x28] sm:$0xff] }
 0x1fe   : > { %v2339_v38 = vpack.i.bf16 %v587_v37, %v586_v36  ;;  %v590_v47 = vpack.c.bf16 %v587_v37, %v586_v36  ;;  %v687_v36 = vsel %vm683_vm2, %v2731_v1, %v2353_v30  ;;  %v686_v37 = vsel %vm683_vm2, %v2729_v0, %v2352_v31 }
 0x200   : > { %2340 = vrot.lane.b32.xlu1 %v2339_v38, %s2569_s16 }
 0x201   : > { %v577_v39 = vpop.f32.mrf.mxu2 }
 0x202   : > { %v584_v40 = vmul.f32 2.0, %v577_v39 }
 0x204   : > { %v588_v43 = vsub.f32 %v584_v40, %v527_v9 }
 0x209   : > { %v579_v41 = vpop.f32.mrf.mxu2 }
 0x20a   : > { %v585_v42 = vmul.f32 2.0, %v579_v41 }
 0x20c   : > { %v589_v44 = vsub.f32 %v585_v42, %v529_v12  ;;  %v2332_v12 = vunpack.i.l.bf16 %v2331_v8  ;;  %v2193_v8 = vld [vmem:[%s3096_s4 + $0x30] sm:$0xff] }
 0x20e   : > { %v2359_v45 = vpack.i.bf16 %v589_v44, %v588_v43  ;;  %v591_v46 = vpack.c.bf16 %v589_v44, %v588_v43  ;;  %v684_v18 = vsel %vm683_vm2, %v2733_v2, %v2332_v12  ;;  %v2191_v12 = vld [vmem:[%s3096_s4 + $0x20] sm:$0xff] }
 0x210   : > { %2360 = vrot.lane.b32.xlu0 %v2359_v45, %s2569_s16  ;;  %598 = vmatpush.bf16.msrb.mxu3 %v591_v46  ;;  %s2502_s16 = sshra.s32 %s1780_s26, 4  ;;  %s2503_s16 = int_to_ptr.hbm [resolvable:$true] %s2502_s16 }
 0x211   : > { %p2509_p3 = scmp.lt.s32.totalorder %s2503_s16, %s3104_s12 }
 0x214   : > { %599 = vmatpush.bf16.msrb.mxu3 %v590_v47 }
 0x217   : > { %1911 = vmatmul.msk.bf16.vlgmr.msrb.gmra.mxu3 %vm506_vm0, %v2744_v6 }
 0x227   : > { %1912 = vmatmul.msk.bf16.gmra.mxu3 %vm506_vm0, %v2746_v7 }
 0x272   : > { %v2341_v9 = vpop.permute.xlu1 %2340 }
 0x273   : > { %v2343_v15 = vunpack.i.h.bf16 %v2341_v9  ;;  %v2342_v16 = vunpack.i.l.bf16 %v2341_v9 }
 0x282   : > { %v2361_v29 = vpop.permute.xlu0 %2360 }
 0x283   : > { %v2363_v34 = vunpack.i.h.bf16 %v2361_v29  ;;  %v2362_v35 = vunpack.i.l.bf16 %v2361_v29 }
 0x29a   : > { %v601_v48 = vpop.f32.mrf.mxu3 }
 0x29b   : > { %v611_v49 = vmul.f32 2.0, %v601_v48 }
 0x29d   : > { %v615_v52 = vsub.f32 %v611_v49, %v557_v20  ;;  %v690_v20 = vsel %vm688_vm4, %v685_v17, %v2338_v13  ;;  %v2389_v49 = vld [vmem:[%s3095_s3] ss:$0 sm:$0xff] }
 0x29e   : > { %v695_v25 = vsel %vm693_vm3, %v690_v20, %v2343_v15  ;;  %v2189_v15 = vld [vmem:[%s3096_s4 + $0x10] sm:$0xff]  ;;  %v2187_v17 = vld [vmem:[%s3096_s4] sm:$0xff] }
 0x2a2   : > { %v603_v50 = vpop.f32.mrf.mxu3 }
 0x2a3   : > { %v612_v51 = vmul.f32 2.0, %v603_v50 }
 0x2a5   : > { %v616_v53 = vsub.f32 %v612_v51, %v558_v21  ;;  %v689_v21 = vsel %vm688_vm4, %v684_v18, %v2337_v14  ;;  %v2190_v14 = vld [vmem:[%s3096_s4 + $0x18] sm:$0xff] }
 0x2a6   : > { %v694_v26 = vsel %vm693_vm3, %v689_v21, %v2342_v16  ;;  %v2188_v16 = vld [vmem:[%s3096_s4 + $0x8] sm:$0xff] }
 0x2a7   : > { %v2344_v54 = vpack.i.bf16 %v616_v53, %v615_v52 }
 0x2a9   : > { %2345 = vrot.lane.b32.xlu1 %v2344_v54, %s2570_s17 }
 0x2aa   : > { %v606_v55 = vpop.f32.mrf.mxu3 }
 0x2ab   : > { %v613_v56 = vmul.f32 2.0, %v606_v55 }
 0x2ad   : > { %v617_v59 = vsub.f32 %v613_v56, %v559_v27 }
 0x2b2   : > { %v608_v57 = vpop.f32.mrf.mxu3 }
 0x2b3   : > { %v614_v58 = vmul.f32 2.0, %v608_v57 }
 0x2b5   : > { %v618_v60 = vsub.f32 %v614_v58, %v560_v28  ;;  %v2356_v28 = vpop.permute.xlu2 %2355 }
 0x2b6   : > { %v2358_v32 = vunpack.i.h.bf16 %v2356_v28  ;;  %v2357_v33 = vunpack.i.l.bf16 %v2356_v28 }
 0x2b7   : > { %v2364_v61 = vpack.i.bf16 %v618_v60, %v617_v59 }
 0x2b8   : > { %v692_v39 = vsel %vm688_vm4, %v687_v36, %v2358_v32  ;;  %v691_v40 = vsel %vm688_vm4, %v686_v37, %v2357_v33 }
 0x2b9   : > { %2365 = vrot.lane.b32.xlu1 %v2364_v61, %s2570_s17  ;;  %v697_v43 = vsel %vm693_vm3, %v692_v39, %v2363_v34  ;;  %v696_v44 = vsel %vm693_vm3, %v691_v40, %v2362_v35  ;;  %s2504_s17 = scalar_lea.hbm %s2503_s16, 8 }
 0x2ba   : > { %p2505_p0 = scmp.ne.s32.totalorder %s2503_s16, %s2504_s17  ;;  %p2510_p4 = scmp.lt.s32.totalorder %s2508_s19, %s2504_s17 }
 0x2bc   : > { %p2506_p1 = pnand %p2505_p0, %p2676_p5  ;;  %p2511_p7 = por %p2510_p4, %p2509_p3 }
 0x2be   : > { %p2507_p2 = pneg %p2506_p1 }
 0x2c0   : > { %p2512_p8 = pnand %p2511_p7, %p2507_p2 }
 0x31b   : > { %v2346_v19 = vpop.permute.xlu1 %2345 }
 0x31c   : > { %v2348_v22 = vunpack.i.h.bf16 %v2346_v19  ;;  %v2347_v23 = vunpack.i.l.bf16 %v2346_v19 }
 0x31e   : > { %v700_v27 = vsel %vm698_vm5, %v695_v25, %v2348_v22  ;;  %v699_v3 = vsel %vm698_vm5, %v694_v26, %v2347_v23 }
 0x31f   : > { %v703_v2 = vpack.c.bf16 %v700_v27, %v699_v3 }
 0x321   : > { %1917 = vmatmul.msk.bf16.vlgmr.msrb.gmra.mxu0 %vm713_vm6, %v703_v2 }
 0x32b   : > { %v2366_v38 = vpop.permute.xlu1 %2365 }
 0x32c   : > { %v2368_v41 = vunpack.i.h.bf16 %v2366_v38  ;;  %v2367_v42 = vunpack.i.l.bf16 %v2366_v38 }
 0x32e   : > { %v701_v45 = vsel %vm698_vm5, %v696_v44, %v2367_v42  ;;  %v702_v46 = vsel %vm698_vm5, %v697_v43, %v2368_v41 }
 0x32f   : > { %v704_v47 = vpack.c.bf16 %v702_v46, %v701_v45  ;;  %v2202_v45 = vld [vmem:[%s3096_s4 + $0x78] sm:$0xff] }
 0x331   : > { %1918 = vmatmul.msk.bf16.gmra.mxu0 %vm713_vm6, %v704_v47 }
 0x39e   : > { %v733_v1 = vpop.f32.mrf.mxu0 }
 0x39f   : > { %v734_v54 = vadd.f32 %v2389_v49, %v733_v1  ;;  %v2201_v1 = vld [vmem:[%s3096_s4 + $0x70] sm:$0xff] }
 0x3a1   : > { %v743_v59 = vmax.f32 %v734_v54, 0.0 }
 0x3a6   : > { %v735_v0 = vpop.f32.mrf.mxu0 }
 0x3a7   : > { %v736_v52 = vadd.f32 %v2389_v49, %v735_v0 }
 0x3a9   : > { %v744_v57 = vmax.f32 %v736_v52, 0.0 }
 0x3ab   : > { %v788_v60 = vpack.c.bf16 %v744_v57, %v743_v59 }
 0x3ae   : > { %v738_v48 = vpop.f32.mrf.mxu0 }
 0x3af   : > { %v739_v50 = vadd.f32 %v2389_v49, %v738_v48 }
 0x3b1   : > { %v2793_v55 = vmax.f32 %v739_v50, 0.0  ;;  %v2200_v50 = vld [vmem:[%s3096_s4 + $0x68] sm:$0xff] }
 0x3b6   : > { %v740_v51 = vpop.f32.mrf.mxu0 }
 0x3b7   : > { %v741_v53 = vadd.f32 %v2389_v49, %v740_v51 }
 0x3b9   : > { %v2795_v56 = vmax.f32 %v741_v53, 0.0  ;;  %v2199_v53 = vld [vmem:[%s3096_s4 + $0x60] sm:$0xff] }
 0x3bb   : > { %v789_v58 = vpack.c.bf16 %v2795_v56, %v2793_v55 }
 0x3bd   : > { %796 = vmatpush.bf16.msrb.mxu1 %v789_v58  ;;  %v2197_v58 = vld [vmem:[%s3096_s4 + $0x50] sm:$0xff] }
 0x3c1   : > { %797 = vmatpush.bf16.msrb.mxu1 %v788_v60  ;;  %v2195_v60 = vld [vmem:[%s3096_s4 + $0x40] sm:$0xff] }
 0x3c4   : > { %1919 = vmatmul.msk.bf16.vlgmr.msrb.gmra.mxu1 %vm506_vm0, %v2744_v6 }
 0x3c5   : > { %1072 = vmatpush.bf16.msra.mxu1 %v2194_v5 }
 0x3c9   : > { %1073 = vmatpush.bf16.msra.mxu1 %v2193_v8 }
 0x3cd   : > { %1074 = vmatpush.bf16.msra.mxu1 %v2192_v10 }
 0x3d1   : > { %1075 = vmatpush.bf16.msra.mxu1 %v2191_v12 }
 0x3d4   : > { %1920 = vmatmul.msk.bf16.gmra.mxu1 %vm506_vm0, %v2746_v7 }
 0x3d5   : > { %1076 = vmatpush.bf16.msra.mxu1 %v2190_v14 }
 0x3d9   : > { %1077 = vmatpush.bf16.msra.mxu1 %v2189_v15  ;;  %v2206_v15 = vld [vmem:[%s3096_s4 + $0x98] sm:$0xff] }
 0x3dd   : > { %1078 = vmatpush.bf16.msra.mxu1 %v2188_v16  ;;  %v2205_v16 = vld [vmem:[%s3096_s4 + $0x90] sm:$0xff] }
 0x3e1   : > { %1079 = vmatpush.bf16.msra.mxu1 %v2187_v17  ;;  %v2204_v17 = vld [vmem:[%s3096_s4 + $0x88] sm:$0xff] }
 0x441   : > { %v799_v61 = vpop.f32.mrf.mxu1 }
 0x449   : > { %v801_v62 = vpop.f32.mrf.mxu1 }
 0x44a   : > { %v2374_v63 = vpack.i.bf16 %v801_v62, %v799_v61  ;;  %v809_v13 = vpack.c.bf16 %v801_v62, %v799_v61 }
 0x44c   : > { %2375 = vrot.lane.b32.xlu0 %v2374_v63, %s2571_s29 }
 0x451   : > { %v2804_v4 = vpop.f32.mrf.mxu1 }
 0x459   : > { %v2812_v9 = vpop.f32.mrf.mxu1 }
 0x45a   : > { %v810_v11 = vpack.c.bf16 %v2812_v9, %v2804_v4  ;;  %v2384_v44 = vpack.i.bf16 %v2812_v9, %v2804_v4 }
 0x45c   : > { %817 = vmatpush.bf16.msrb.mxu2 %v810_v11 }
 0x460   : > { %818 = vmatpush.bf16.msrb.mxu2 %v809_v13 }
 0x463   : > { %1921 = vmatmul.msk.bf16.vlgmr.msrb.gmra.mxu2 %vm506_vm0, %v2744_v6 }
 0x464   : > { %1091 = vmatpush.bf16.msra.mxu2 %v2202_v45 }
 0x468   : > { %1092 = vmatpush.bf16.msra.mxu2 %v2201_v1 }
 0x46c   : > { %1093 = vmatpush.bf16.msra.mxu2 %v2200_v50 }
 0x470   : > { %1094 = vmatpush.bf16.msra.mxu2 %v2199_v53 }
 0x473   : > { %1922 = vmatmul.msk.bf16.gmra.mxu2 %vm506_vm0, %v2746_v7 }
 0x4be   : > { %v2376_v18 = vpop.permute.xlu0 %2375 }
 0x4bf   : > { %v2378_v19 = vunpack.i.h.bf16 %v2376_v18  ;;  %v2377_v20 = vunpack.i.l.bf16 %v2376_v18 }
 0x4c1   : > { %v930_v21 = vsel %vm928_vm7, %v744_v57, %v2378_v19  ;;  %v929_v22 = vsel %vm928_vm7, %v743_v59, %v2377_v20 }
 0x4c2   : > { %v937_v23 = vpack.c.bf16 %v930_v21, %v929_v22 }
 0x4c4   : > { %1080 = vmatmul.bf16.vlgmr.msra.gmra.mxu1 %v937_v23 }
 0x4e6   : > { %v820_v24 = vpop.f32.mrf.mxu2 }
 0x4e7   : > { %v830_v29 = vmul.f32 2.0, %v820_v24 }
 0x4e9   : > { %v2850_v34 = vsub.f32 %v830_v29, %v743_v59  ;;  %v2196_v59 = vld [vmem:[%s3096_s4 + $0x48] sm:$0xff] }
 0x4ee   : > { %v822_v25 = vpop.f32.mrf.mxu2 }
 0x4ef   : > { %v831_v2 = vmul.f32 2.0, %v822_v25 }
 0x4f1   : > { %v2846_v32 = vsub.f32 %v831_v2, %v744_v57  ;;  %v2198_v57 = vld [vmem:[%s3096_s4 + $0x58] sm:$0xff] }
 0x4f2   : > { %1095 = vmatpush.bf16.msra.mxu2 %v2198_v57 }
 0x4f3   : > { %v838_v35 = vpack.c.bf16 %v2846_v32, %v2850_v34 }
 0x4f6   : > { %v825_v26 = vpop.f32.mrf.mxu2  ;;  %1096 = vmatpush.bf16.msra.mxu2 %v2197_v58 }
 0x4f7   : > { %v832_v27 = vmul.f32 2.0, %v825_v26 }
 0x4f9   : > { %v2841_v30 = vsub.f32 %v832_v27, %v2793_v55 }
 0x4fa   : > { %1097 = vmatpush.bf16.msra.mxu2 %v2196_v59 }
 0x4fe   : > { %v827_v3 = vpop.f32.mrf.mxu2  ;;  %1098 = vmatpush.bf16.msra.mxu2 %v2195_v60 }
 0x4ff   : > { %v833_v28 = vmul.f32 2.0, %v827_v3 }
 0x501   : > { %v2844_v31 = vsub.f32 %v833_v28, %v2795_v56 }
 0x503   : > { %v839_v33 = vpack.c.bf16 %v2844_v31, %v2841_v30 }
 0x505   : > { %846 = vmatpush.bf16.msra.mxu3 %v839_v33 }
 0x509   : > { %847 = vmatpush.bf16.msra.mxu3 %v838_v35 }
 0x50c   : > { %1923 = vmatmul.msk.bf16.vlgmr.msra.gmra.mxu3 %vm506_vm0, %v2744_v6 }
 0x50d   : > { %1114 = vmatpush.bf16.msrb.mxu3 %v2206_v15  ;;  %v2207_v15 = vld [vmem:[#allocation5] sm:$0xff] }
 0x511   : > { %1115 = vmatpush.bf16.msrb.mxu3 %v2205_v16 }
 0x515   : > { %1116 = vmatpush.bf16.msrb.mxu3 %v2204_v17 }
 0x51c   : > { %1924 = vmatmul.msk.bf16.gmra.mxu3 %vm506_vm0, %v2746_v7 }
 0x58f   : > { %v849_v36 = vpop.f32.mrf.mxu3 }
 0x590   : > { %v859_v37 = vmul.f32 2.0, %v849_v36 }
 0x592   : > { %v863_v40 = vsub.f32 %v859_v37, %v799_v61 }
 0x597   : > { %v851_v38 = vpop.f32.mrf.mxu3 }
 0x598   : > { %v860_v39 = vmul.f32 2.0, %v851_v38 }
 0x59a   : > { %v864_v41 = vsub.f32 %v860_v39, %v801_v62  ;;  %v1081_v39 = vpop.f32.mrf.mxu1 }
 0x59c   : > { %v2369_v42 = vpack.i.bf16 %v864_v41, %v863_v40  ;;  %v867_v54 = vpack.c.bf16 %v864_v41, %v863_v40 }
 0x59e   : > { %2370 = vrot.lane.b32.xlu2 %v2369_v42, %s2571_s29 }
 0x59f   : > { %v854_v43 = vpop.f32.mrf.mxu3 }
 0x5a0   : > { %v861_v46 = vmul.f32 2.0, %v854_v43 }
 0x5a2   : > { %v865_v48 = vsub.f32 %v861_v46, %v2804_v4  ;;  %v1083_v41 = vpop.f32.mrf.mxu1  ;;  %v2390_v46 = vld [vmem:[%s3097_s5] ss:$0 sm:$0xff] }
 0x5a6   : > { %2385 = vrot.lane.b32.xlu2 %v2384_v44, %s2571_s29 }
 0x5a7   : > { %v856_v47 = vpop.f32.mrf.mxu3 }
 0x5a8   : > { %v862_v0 = vmul.f32 2.0, %v856_v47 }
 0x5aa   : > { %v866_v49 = vsub.f32 %v862_v0, %v2812_v9 }
 0x5ac   : > { %v868_v51 = vpack.c.bf16 %v866_v49, %v865_v48  ;;  %v2379_v52 = vpack.i.bf16 %v866_v49, %v865_v48  ;;  %v1082_v49 = vadd.f32 %v2390_v46, %v1081_v39 }
 0x5ae   : > { %2380 = vrot.lane.b32.xlu1 %v2379_v52, %s2571_s29  ;;  %875 = vmatpush.bf16.msra.mxu0 %v868_v51 }
 0x5b2   : > { %876 = vmatpush.bf16.msra.mxu0 %v867_v54 }
 0x5b5   : > { %1925 = vmatmul.msk.bf16.vlgmr.msra.gmra.mxu0 %vm506_vm0, %v2744_v6 }
 0x5c5   : > { %1926 = vmatmul.msk.bf16.gmra.mxu0 %vm506_vm0, %v2746_v7 }
 0x5f8   : > { %v2371_v61 = vpop.permute.xlu2 %2370 }
 0x5f9   : > { %v2373_v62 = vunpack.i.h.bf16 %v2371_v61  ;;  %v2372_v63 = vunpack.i.l.bf16 %v2371_v61 }
 0x5fb   : > { %v934_v4 = vsel %vm928_vm7, %v2846_v32, %v2373_v62  ;;  %v933_v5 = vsel %vm928_vm7, %v2850_v34, %v2372_v63 }
 0x5fc   : > { %v938_v8 = vpack.c.bf16 %v934_v4, %v933_v5  ;;  %v2214_v5 = vld [vmem:[#allocation5 + $0x38] sm:$0xff] }
 0x5fe   : > { %1099 = vmatmul.bf16.vlgmr.msra.gmra.mxu2 %v938_v8 }
 0x600   : > { %v2386_v9 = vpop.permute.xlu2 %2385 }
 0x601   : > { %v2388_v10 = vunpack.i.h.bf16 %v2386_v9  ;;  %v2387_v11 = vunpack.i.l.bf16 %v2386_v9  ;;  %v2213_v9 = vld [vmem:[#allocation5 + $0x30] sm:$0xff] }
 0x603   : > { %v931_v12 = vsel %vm928_vm7, %v2793_v55, %v2387_v11  ;;  %v932_v13 = vsel %vm928_vm7, %v2795_v56, %v2388_v10  ;;  %v2203_v55 = vld [vmem:[%s3096_s4 + $0x80] sm:$0xff]  ;;  %v2212_v10 = vld [vmem:[#allocation5 + $0x28] sm:$0xff]  ;;  %v2211_v11 = vld [vmem:[#allocation5 + $0x20] sm:$0xff] }
 0x604   : > { %v940_v14 = vpack.c.bf16 %v932_v13, %v931_v12  ;;  %1117 = vmatpush.bf16.msrb.mxu3 %v2203_v55  ;;  %v2210_v12 = vld [vmem:[#allocation5 + $0x18] sm:$0xff]  ;;  %v2209_v13 = vld [vmem:[#allocation5 + $0x10] sm:$0xff] }
 0x606   : > { %1085 = vmatmul.bf16.gmra.mxu1 %v940_v14  ;;  %v2208_v14 = vld [vmem:[#allocation5 + $0x8] sm:$0xff] }
 0x620   : > { %v2381_v56 = vpop.permute.xlu1 %2380 }
 0x621   : > { %v2383_v18 = vunpack.i.h.bf16 %v2381_v56  ;;  %v2382_v19 = vunpack.i.l.bf16 %v2381_v56 }
 0x623   : > { %v935_v20 = vsel %vm928_vm7, %v2841_v30, %v2382_v19  ;;  %v936_v21 = vsel %vm928_vm7, %v2844_v31, %v2383_v18  ;;  %v2222_v19 = vld [vmem:[#allocation5 + $0x78] sm:$0xff] }
 0x624   : > { %v941_v22 = vpack.c.bf16 %v936_v21, %v935_v20  ;;  %v2221_v21 = vld [vmem:[#allocation5 + $0x70] sm:$0xff] }
 0x626   : > { %1104 = vmatmul.bf16.gmra.mxu2 %v941_v22  ;;  %v2220_v22 = vld [vmem:[#allocation5 + $0x68] sm:$0xff] }
 0x632   : > { %v878_v23 = vpop.f32.mrf.mxu0 }
 0x633   : > { %v888_v24 = vmul.f32 2.0, %v878_v23  ;;  %v2219_v23 = vld [vmem:[#allocation5 + $0x60] sm:$0xff] }
 0x635   : > { %v892_v27 = vsub.f32 %v888_v24, %v2850_v34  ;;  %v2218_v24 = vld [vmem:[#allocation5 + $0x58] sm:$0xff] }
 0x63a   : > { %v880_v25 = vpop.f32.mrf.mxu0 }
 0x63b   : > { %v889_v26 = vmul.f32 2.0, %v880_v25  ;;  %v2217_v25 = vld [vmem:[#allocation5 + $0x50] sm:$0xff] }
 0x63d   : > { %v893_v3 = vsub.f32 %v889_v26, %v2846_v32  ;;  %v2216_v26 = vld [vmem:[#allocation5 + $0x48] sm:$0xff] }
 0x63f   : > { %v939_v2 = vpack.c.bf16 %v893_v3, %v892_v27  ;;  %v2215_v27 = vld [vmem:[#allocation5 + $0x40] sm:$0xff] }
 0x641   : > { %2007 = vmatmul.msk.bf16.vlgmr.msrb.gmra.mxu3 %vm928_vm7, %v939_v2 }
 0x642   : > { %v883_v28 = vpop.f32.mrf.mxu0 }
 0x643   : > { %v890_v29 = vmul.f32 2.0, %v883_v28 }
 0x645   : > { %v894_v36 = vsub.f32 %v890_v29, %v2841_v30 }
 0x64a   : > { %v885_v33 = vpop.f32.mrf.mxu0 }
 0x64b   : > { %v891_v35 = vmul.f32 2.0, %v885_v33 }
 0x64d   : > { %v895_v37 = vsub.f32 %v891_v35, %v2844_v31  ;;  %v1084_v31 = vadd.f32 %v2390_v46, %v1083_v41 }
 0x64f   : > { %v942_v38 = vpack.c.bf16 %v895_v37, %v894_v36 }
 0x651   : > { %2008 = vmatmul.msk.bf16.gmra.mxu3 %vm928_vm7, %v942_v38 }
 0x681   : > { %v1100_v40 = vpop.f32.mrf.mxu2 }
 0x682   : > { %v1101_v54 = vadd.f32 %v1100_v40, %v1082_v49 }
 0x683   : > { %v1086_v32 = vpop.f32.mrf.mxu1 }
 0x684   : > { %v1087_v30 = vadd.f32 %v2390_v46, %v1086_v32 }
 0x689   : > { %v1102_v42 = vpop.f32.mrf.mxu2 }
 0x68a   : > { %v1103_v50 = vadd.f32 %v1102_v42, %v1084_v31  ;;  %v2230_v42 = vld [vmem:[#allocation5 + $0xb8] sm:$0xff] }
 0x68b   : > { %v1088_v47 = vpop.f32.mrf.mxu1 }
 0x68c   : > { %v1089_v0 = vadd.f32 %v2390_v46, %v1088_v47  ;;  %v2226_v46 = vld [vmem:[#allocation5 + $0x98] sm:$0xff]  ;;  %v2225_v47 = vld [vmem:[#allocation5 + $0x90] sm:$0xff] }
 0x6a9   : > { %v1105_v44 = vpop.f32.mrf.mxu2 }
 0x6aa   : > { %v1106_v48 = vadd.f32 %v1105_v44, %v1087_v30  ;;  %v2228_v44 = vld [vmem:[#allocation5 + $0xa8] sm:$0xff] }
 0x6ab   : > { %v2224_v30 = vld [vmem:[#allocation5 + $0x88] sm:$0xff] }
 0x6b1   : > { %v1107_v1 = vpop.f32.mrf.mxu2 }
 0x6b2   : > { %v1108_v51 = vadd.f32 %v1107_v1, %v1089_v0  ;;  %v2223_v1 = vld [vmem:[#allocation5 + $0x80] sm:$0xff] }
 0x6c4   : > { %v1119_v34 = vpop.f32.mrf.mxu3 }
 0x6c5   : > { %v2932_v59 = vadd.f32 %v1119_v34, %v1101_v54 }
 0x6c7   : > { %v1129_v4 = vmax.f32 %v2932_v59, 0.0 }
 0x6cc   : > { %v1121_v43 = vpop.f32.mrf.mxu3 }
 0x6cd   : > { %v2928_v57 = vadd.f32 %v1121_v43, %v1103_v50  ;;  %v2229_v43 = vld [vmem:[#allocation5 + $0xb0] sm:$0xff] }
 0x6cf   : > { %v1130_v62 = vmax.f32 %v2928_v57, 0.0 }
 0x6d1   : > { %v1214_v8 = vpack.c.bf16 %v1130_v62, %v1129_v4 }
 0x6d4   : > { %v1124_v45 = vpop.f32.mrf.mxu3 }
 0x6d5   : > { %v2926_v52 = vadd.f32 %v1124_v45, %v1106_v48  ;;  %v2227_v45 = vld [vmem:[#allocation5 + $0xa0] sm:$0xff] }
 0x6d7   : > { %v1131_v60 = vmax.f32 %v2926_v52, 0.0 }
 0x6dc   : > { %v1126_v53 = vpop.f32.mrf.mxu3 }
 0x6dd   : > { %v2930_v58 = vadd.f32 %v1126_v53, %v1108_v51 }
 0x6df   : > { %v1132_v61 = vmax.f32 %v2930_v58, 0.0 }
 0x6e1   : > { %v1215_v63 = vpack.c.bf16 %v1132_v61, %v1131_v60 }
 0x6e3   : > { %1222 = vmatpush.bf16.msrb.mxu0 %v1215_v63 }
 0x6e7   : > { %1223 = vmatpush.bf16.msrb.mxu0 %v1214_v8 }
 0x6ea   : > { %2009 = vmatmul.msk.bf16.vlgmr.msrb.gmra.mxu0 %vm506_vm0, %v2744_v6 }
 0x6eb   : > { %1567 = vmatpush.bf16.msra.mxu0 %v2214_v5  ;;  %v2235_v5 = vld [vmem:[#allocation5 + $0xe0] sm:$0xff] }
 0x6ef   : > { %1568 = vmatpush.bf16.msra.mxu0 %v2213_v9  ;;  %v2233_v9 = vld [vmem:[#allocation5 + $0xd0] sm:$0xff] }
 0x6f3   : > { %1569 = vmatpush.bf16.msra.mxu0 %v2212_v10  ;;  %v2246_v10 = vld [vmem:[#allocation5 + $0x138] sm:$0xff] }
 0x6f7   : > { %1570 = vmatpush.bf16.msra.mxu0 %v2211_v11  ;;  %v2232_v11 = vld [vmem:[#allocation5 + $0xc8] sm:$0xff] }
 0x6fa   : > { %2010 = vmatmul.msk.bf16.gmra.mxu0 %vm506_vm0, %v2746_v7 }
 0x6fb   : > { %1571 = vmatpush.bf16.msra.mxu0 %v2210_v12  ;;  %v2245_v12 = vld [vmem:[#allocation5 + $0x130] sm:$0xff] }
 0x6ff   : > { %1572 = vmatpush.bf16.msra.mxu0 %v2209_v13  ;;  %v2231_v13 = vld [vmem:[#allocation5 + $0xc0] sm:$0xff] }
 0x703   : > { %1573 = vmatpush.bf16.msra.mxu0 %v2208_v14  ;;  %v2243_v14 = vld [vmem:[#allocation5 + $0x120] sm:$0xff] }
 0x707   : > { %1574 = vmatpush.bf16.msra.mxu0 %v2207_v15  ;;  %v2242_v15 = vld [vmem:[#allocation5 + $0x118] sm:$0xff] }
 0x70a   : > { %1575 = vmatmul.bf16.vlgmr.msra.gmra.mxu0 %v1214_v8  ;;  %v2234_v8 = vld [vmem:[#allocation5 + $0xd8] sm:$0xff] }
 0x70b   : > { %1643 = vmatpush.bf16.msrb.mxu0 %v2246_v10 }
 0x70f   : > { %1644 = vmatpush.bf16.msrb.mxu0 %v2245_v12 }
 0x71a   : > { %1580 = vmatmul.bf16.gmra.mxu0 %v1215_v63  ;;  %v2237_v63 = vld [vmem:[#allocation5 + $0xf0] sm:$0xff] }
 0x767   : > { %v2950_v16 = vpop.f32.mrf.mxu0 }
 0x76f   : > { %v2952_v17 = vpop.f32.mrf.mxu0 }
 0x770   : > { %v1235_v20 = vpack.c.bf16 %v2952_v17, %v2950_v16 }
 0x777   : > { %v2954_v55 = vpop.f32.mrf.mxu0 }
 0x77f   : > { %v2956_v56 = vpop.f32.mrf.mxu0 }
 0x780   : > { %v1236_v18 = vpack.c.bf16 %v2956_v56, %v2954_v55 }
 0x782   : > { %1243 = vmatpush.bf16.msrb.mxu1 %v1236_v18 }
 0x786   : > { %1244 = vmatpush.bf16.msrb.mxu1 %v1235_v20 }
 0x789   : > { %2011 = vmatmul.msk.bf16.vlgmr.msrb.gmra.mxu1 %vm506_vm0, %v2744_v6 }
 0x78a   : > { %1586 = vmatpush.bf16.msra.mxu1 %v2222_v19 }
 0x78e   : > { %1587 = vmatpush.bf16.msra.mxu1 %v2221_v21 }
 0x792   : > { %1588 = vmatpush.bf16.msra.mxu1 %v2220_v22 }
 0x796   : > { %1589 = vmatpush.bf16.msra.mxu1 %v2219_v23 }
 0x799   : > { %2012 = vmatmul.msk.bf16.gmra.mxu1 %vm506_vm0, %v2746_v7 }
 0x79a   : > { %1590 = vmatpush.bf16.msra.mxu1 %v2218_v24 }
 0x79e   : > { %1591 = vmatpush.bf16.msra.mxu1 %v2217_v25 }
 0x7a2   : > { %1592 = vmatpush.bf16.msra.mxu1 %v2216_v26 }
 0x7a6   : > { %1593 = vmatpush.bf16.msra.mxu1 %v2215_v27 }
 0x7a9   : > { %1594 = vmatmul.bf16.vlgmr.msra.gmra.mxu1 %v1235_v20 }
 0x7b9   : > { %1599 = vmatmul.bf16.gmra.mxu1 %v1236_v18 }
 0x806   : > { %v1246_v3 = vpop.f32.mrf.mxu1 }
 0x807   : > { %v1256_v37 = vmul.f32 2.0, %v1246_v3 }
 0x809   : > { %v2982_v34 = vsub.f32 %v1256_v37, %v1129_v4  ;;  %v2236_v4 = vld [vmem:[#allocation5 + $0xe8] sm:$0xff]  ;;  %v1696_v37 = vld [vmem:[%s3100_s8 + $0x68] sm:$0xff] }
 0x80e   : > { %v1248_v2 = vpop.f32.mrf.mxu1 }
 0x80f   : > { %v1257_v35 = vmul.f32 2.0, %v1248_v2 }
 0x811   : > { %v2976_v40 = vsub.f32 %v1257_v35, %v1130_v62 }
 0x813   : > { %v1264_v32 = vpack.c.bf16 %v2976_v40, %v2982_v34 }
 0x816   : > { %v1251_v28 = vpop.f32.mrf.mxu1 }
 0x817   : > { %v1258_v29 = vmul.f32 2.0, %v1251_v28  ;;  %v1576_v28 = vpop.f32.mrf.mxu0 }
 0x819   : > { %v2968_v38 = vsub.f32 %v1258_v29, %v1131_v60 }
 0x81e   : > { %v1253_v33 = vpop.f32.mrf.mxu1 }
 0x81f   : > { %v1259_v36 = vmul.f32 2.0, %v1253_v33  ;;  %v1578_v29 = vpop.f32.mrf.mxu0  ;;  %v1698_v33 = vld [vmem:[%s3100_s8 + $0x78] sm:$0xff] }
 0x820   : > { %1700 = vmatpush.msrb.mxu1 %v1698_v33 }
 0x821   : > { %v2972_v39 = vsub.f32 %v1259_v36, %v1132_v61  ;;  %v2238_v61 = vld [vmem:[#allocation5 + $0xf8] sm:$0xff]  ;;  %v1697_v36 = vld [vmem:[%s3100_s8 + $0x70] sm:$0xff] }
 0x822   : > { %1701 = vmatpush.msrb.mxu1 %v1697_v36 }
 0x823   : > { %v1265_v41 = vpack.c.bf16 %v2972_v39, %v2968_v38 }
 0x824   : > { %1702 = vmatpush.msrb.mxu1 %v1696_v37 }
 0x825   : > { %1272 = vmatpush.bf16.msrb.mxu2 %v1265_v41 }
 0x827   : > { %v1581_v35 = vpop.f32.mrf.mxu0 }
 0x829   : > { %1273 = vmatpush.bf16.msrb.mxu2 %v1264_v32 }
 0x82c   : > { %2013 = vmatmul.msk.bf16.vlgmr.msrb.gmra.mxu2 %vm506_vm0, %v2744_v6 }
 0x82d   : > { %1605 = vmatpush.bf16.msra.mxu2 %v2230_v42  ;;  %v1693_v42 = vld [vmem:[%s3100_s8 + $0x50] sm:$0xff] }
 0x831   : > { %1606 = vmatpush.bf16.msra.mxu2 %v2229_v43  ;;  %v1692_v43 = vld [vmem:[%s3100_s8 + $0x48] sm:$0xff] }
 0x835   : > { %1607 = vmatpush.bf16.msra.mxu2 %v2228_v44  ;;  %v1691_v44 = vld [vmem:[%s3100_s8 + $0x40] sm:$0xff] }
 0x839   : > { %1608 = vmatpush.bf16.msra.mxu2 %v2227_v45 }
 0x83c   : > { %2014 = vmatmul.msk.bf16.gmra.mxu2 %vm506_vm0, %v2746_v7 }
 0x83d   : > { %1609 = vmatpush.bf16.msra.mxu2 %v2226_v46  ;;  %v1690_v46 = vld [vmem:[%s3100_s8 + $0x38] sm:$0xff] }
 0x841   : > { %1610 = vmatpush.bf16.msra.mxu2 %v2225_v47 }
 0x845   : > { %1611 = vmatpush.bf16.msra.mxu2 %v2224_v30  ;;  %v1689_v30 = vld [vmem:[%s3100_s8 + $0x30] sm:$0xff] }
 0x849   : > { %1612 = vmatpush.bf16.msra.mxu2 %v2223_v1 }
 0x84c   : > { %1613 = vmatmul.bf16.vlgmr.msra.gmra.mxu2 %v1264_v32  ;;  %v1583_v32 = vpop.f32.mrf.mxu0 }
 0x85c   : > { %1618 = vmatmul.bf16.gmra.mxu2 %v1265_v41  ;;  %v1694_v41 = vld [vmem:[%s3100_s8 + $0x58] sm:$0xff] }
 0x8af   : > { %v1275_v31 = vpop.f32.mrf.mxu2 }
 0x8b0   : > { %v1285_v53 = vmul.f32 2.0, %v1275_v31 }
 0x8b2   : > { %v1289_v60 = vsub.f32 %v1285_v53, %v2950_v16  ;;  %v2241_v16 = vld [vmem:[#allocation5 + $0x110] sm:$0xff] }
 0x8b7   : > { %v1277_v0 = vpop.f32.mrf.mxu2 }
 0x8b8   : > { %v1286_v51 = vmul.f32 2.0, %v1277_v0  ;;  %v1688_v0 = vld [vmem:[%s3100_s8 + $0x28] sm:$0xff] }
 0x8ba   : > { %v1290_v58 = vsub.f32 %v1286_v51, %v2952_v17  ;;  %v2239_v17 = vld [vmem:[#allocation5 + $0x100] sm:$0xff]  ;;  %v2391_v51 = vld [vmem:[%s3099_s7] ss:$0 sm:$0xff] }
 0x8bc   : > { %v1293_v62 = vpack.c.bf16 %v1290_v58, %v1289_v60  ;;  %v1684_v58 = vld [vmem:[%s3100_s8 + $0x8] sm:$0xff] }
 0x8bf   : > { %v1280_v48 = vpop.f32.mrf.mxu2 }
 0x8c0   : > { %v1287_v49 = vmul.f32 2.0, %v1280_v48  ;;  %v1687_v48 = vld [vmem:[%s3100_s8 + $0x20] sm:$0xff] }
 0x8c2   : > { %v1291_v54 = vsub.f32 %v1287_v49, %v2954_v55  ;;  %v1686_v49 = vld [vmem:[%s3100_s8 + $0x18] sm:$0xff] }
 0x8c7   : > { %v1282_v50 = vpop.f32.mrf.mxu2 }
 0x8c8   : > { %v1288_v52 = vmul.f32 2.0, %v1282_v50 }
 0x8ca   : > { %v1292_v57 = vsub.f32 %v1288_v52, %v2956_v56  ;;  %v1685_v52 = vld [vmem:[%s3100_s8 + $0x10] sm:$0xff] }
 0x8cc   : > { %v1294_v59 = vpack.c.bf16 %v1292_v57, %v1291_v54  ;;  %v1579_v57 = vadd.f32 %v2391_v51, %v1578_v29 }
 0x8ce   : > { %1301 = vmatpush.bf16.msra.mxu3 %v1294_v59 }
 0x8d2   : > { %1302 = vmatpush.bf16.msra.mxu3 %v1293_v62 }
 0x8d5   : > { %2015 = vmatmul.msk.bf16.vlgmr.msra.gmra.mxu3 %vm506_vm0, %v2744_v6  ;;  %v2244_v6 = vld [vmem:[#allocation5 + $0x128] sm:$0xff] }
 0x8d6   : > { %1624 = vmatpush.bf16.msrb.mxu3 %v2238_v61  ;;  %1645 = vmatpush.bf16.msrb.mxu0 %v2244_v6  ;;  %v1577_v61 = vadd.f32 %v2391_v51, %v1576_v28 }
 0x8da   : > { %1625 = vmatpush.bf16.msrb.mxu3 %v2237_v63  ;;  %1646 = vmatpush.bf16.msrb.mxu0 %v2243_v14 }
 0x8de   : > { %1626 = vmatpush.bf16.msrb.mxu3 %v2236_v4  ;;  %1647 = vmatpush.bf16.msrb.mxu0 %v2242_v15  ;;  %v1584_v15 = vadd.f32 %v2391_v51, %v1583_v32 }
 0x8e2   : > { %1627 = vmatpush.bf16.msrb.mxu3 %v2235_v5  ;;  %1648 = vmatpush.bf16.msrb.mxu0 %v2241_v16 }
 0x8e5   : > { %2016 = vmatmul.msk.bf16.gmra.mxu3 %vm506_vm0, %v2746_v7  ;;  %v2240_v7 = vld [vmem:[#allocation5 + $0x108] sm:$0xff] }
 0x8e6   : > { %1628 = vmatpush.bf16.msrb.mxu3 %v2234_v8  ;;  %1649 = vmatpush.bf16.msrb.mxu0 %v2240_v7 }
 0x8ea   : > { %1629 = vmatpush.bf16.msrb.mxu3 %v2233_v9  ;;  %1650 = vmatpush.bf16.msrb.mxu0 %v2239_v17  ;;  %v1724_v9 = vld [vmem:[#allocation7 + $0x18] sm:$0xff] }
 0x8eb   : > { %1741 = vmatpush.msrb.mxu2 %v1724_v9 }
 0x8ee   : > { %1630 = vmatpush.bf16.msrb.mxu3 %v2232_v11 }
 0x8f2   : > { %1631 = vmatpush.bf16.msrb.mxu3 %v2231_v13  ;;  %v2572_v13 = vmov 32.0  }
 0x8f3   : > { %2392 = vrcp.f32 %v2572_v13 }
 0x8f5   : > { %1632 = vmatmul.bf16.vlgmr.msrb.gmra.mxu3 %v1293_v62  ;;  %v1582_v62 = vadd.f32 %v2391_v51, %v1581_v35 }
 0x905   : > { %1637 = vmatmul.bf16.gmra.mxu3 %v1294_v59  ;;  %v1683_v59 = vld [vmem:[%s3100_s8] sm:$0xff] }
 0x958   : > { %v1304_v55 = vpop.f32.mrf.mxu3 }
 0x959   : > { %v1314_v56 = vmul.f32 2.0, %v1304_v55 }
 0x95b   : > { %v1318_v20 = vsub.f32 %v1314_v56, %v2982_v34 }
 0x960   : > { %v1306_v18 = vpop.f32.mrf.mxu3 }
 0x961   : > { %v1315_v19 = vmul.f32 2.0, %v1306_v18 }
 0x963   : > { %v1319_v21 = vsub.f32 %v1315_v19, %v2976_v40  ;;  %v1614_v40 = vpop.f32.mrf.mxu2 }
 0x965   : > { %v1322_v22 = vpack.c.bf16 %v1319_v21, %v1318_v20  ;;  %v2393_v21 = vpop.eup %2392 }
 0x966   : > { %vm1680_vm8 = vweird.f32 %v2393_v21 }
 0x967   : > { %1651 = vmatmul.bf16.vlgmr.msrb.gmra.mxu0 %v1322_v22 }
 0x968   : > { %v1309_v23 = vpop.f32.mrf.mxu3 }
 0x969   : > { %v1316_v24 = vmul.f32 2.0, %v1309_v23 }
 0x96b   : > { %v1320_v27 = vsub.f32 %v1316_v24, %v2968_v38  ;;  %v1595_v38 = vpop.f32.mrf.mxu1  ;;  %v1616_v47 = vpop.f32.mrf.mxu2 }
 0x96c   : > { %v1596_v4 = vadd.f32 %v1595_v38, %v1577_v61 }
 0x96e   : > { %v1615_v10 = vadd.f32 %v1614_v40, %v1596_v4 }
 0x970   : > { %v1311_v25 = vpop.f32.mrf.mxu3 }
 0x971   : > { %v1317_v26 = vmul.f32 2.0, %v1311_v25 }
 0x973   : > { %v1321_v3 = vsub.f32 %v1317_v26, %v2972_v39  ;;  %v1695_v39 = vld [vmem:[%s3100_s8 + $0x60] sm:$0xff]  ;;  %v1597_v45 = vpop.f32.mrf.mxu1  ;;  %v1619_v53 = vpop.f32.mrf.mxu2 }
 0x974   : > { %1703 = vmatpush.msrb.mxu1 %v1695_v39  ;;  %v1598_v63 = vadd.f32 %v1597_v45, %v1579_v57  ;;  %v1723_v45 = vld [vmem:[#allocation7 + $0x10] sm:$0xff] }
 0x975   : > { %v1323_v2 = vpack.c.bf16 %v1321_v3, %v1320_v27  ;;  %v1676_v3 = vmul.f32 32.0, %v2393_v21  ;;  %1742 = vmatpush.msrb.mxu2 %v1723_v45 }
 0x976   : > { %1704 = vmatpush.msrb.mxu1 %v1694_v41  ;;  %v1617_v8 = vadd.f32 %v1616_v47, %v1598_v63  ;;  %v1721_v47 = vld [vmem:[#allocation7] sm:$0xff] }
 0x977   : > { %1656 = vmatmul.bf16.gmra.mxu0 %v1323_v2  ;;  %v1677_v35 = vsub.f32 1.0, %v1676_v3 }
 0x978   : > { %v1633_v34 = vpop.f32.mrf.mxu3  ;;  %1705 = vmatpush.msrb.mxu1 %v1693_v42 }
 0x979   : > { %v1634_v16 = vadd.f32 %v1633_v34, %v1615_v10  ;;  %v1678_v38 = vmul.f32 %v2393_v21, %v1677_v35 }
 0x97a   : > { %1706 = vmatpush.msrb.mxu1 %v1692_v43 }
 0x97b   : > { %v1600_v50 = vpop.f32.mrf.mxu1  ;;  %v1621_v55 = vpop.f32.mrf.mxu2  ;;  %v1679_v41 = vadd.f32 %v2393_v21, %v1678_v38 }
 0x97c   : > { %1707 = vmatpush.msrb.mxu1 %v1691_v44  ;;  %v1601_v5 = vadd.f32 %v1600_v50, %v1582_v62 }
 0x97d   : > { %v1681_v32 = vsel %vm1680_vm8, %v2393_v21, %v1679_v41 }
 0x97e   : > { %1708 = vmatpush.msrb.mxu1 %v1690_v46  ;;  %v1620_v11 = vadd.f32 %v1619_v53, %v1601_v5  ;;  %v1722_v46 = vld [vmem:[#allocation7 + $0x8] sm:$0xff] }
 0x97f   : > { %1743 = vmatpush.msrb.mxu2 %v1722_v46 }
 0x980   : > { %v1635_v1 = vpop.f32.mrf.mxu3  ;;  %1709 = vmatpush.msrb.mxu1 %v1689_v30  ;;  %v1699_v30 = vld [vmem:[%s3101_s9] sm:$0x1] }
 0x981   : > { %v1636_v12 = vadd.f32 %v1635_v1, %v1617_v8  ;;  %1744 = vmatpush.msrb.mxu2 %v1721_v47 }
 0x982   : > { %1710 = vmatpush.msrb.mxu1 %v1688_v0 }
 0x983   : > { %v1602_v6 = vpop.f32.mrf.mxu1 }
 0x984   : > { %1711 = vmatpush.msrb.mxu1 %v1687_v48  ;;  %v1603_v56 = vadd.f32 %v1602_v6, %v1584_v15  ;;  %v1725_v48 = vld [vmem:[%s3103_s11] sm:$0x1] }
 0x986   : > { %1712 = vmatpush.msrb.mxu1 %v1686_v49  ;;  %v1622_v22 = vadd.f32 %v1621_v55, %v1603_v56 }
 0x988   : > { %1713 = vmatpush.msrb.mxu1 %v1685_v52  ;;  %v1638_v60 = vpop.f32.mrf.mxu3 }
 0x989   : > { %v1639_v7 = vadd.f32 %v1638_v60, %v1620_v11 }
 0x98a   : > { %1714 = vmatpush.msrb.mxu1 %v1684_v58 }
 0x98c   : > { %1715 = vmatpush.msrb.mxu1 %v1683_v59 }
 0x990   : > { %v1640_v20 = vpop.f32.mrf.mxu3 }
 0x991   : > { %v1641_v24 = vadd.f32 %v1640_v20, %v1622_v22 }
 0x9e4   : > { %v1652_v31 = vpop.f32.mrf.mxu0 }
 0x9e5   : > { %v1653_v18 = vadd.f32 %v1652_v31, %v1634_v16 }
 0x9e7   : > { %v1662_v25 = vmax.f32 %v1653_v18, 0.0 }
 0x9ec   : > { %v1654_v54 = vpop.f32.mrf.mxu0 }
 0x9ed   : > { %v1655_v17 = vadd.f32 %v1654_v54, %v1636_v12 }
 0x9ef   : > { %v1663_v23 = vmax.f32 %v1655_v17, 0.0 }
 0x9f1   : > { %v1666_v2 = vadd.f32 %v1663_v23, %v1662_v25 }
 0x9f4   : > { %v1657_v14 = vpop.f32.mrf.mxu0 }
 0x9f5   : > { %v1658_v19 = vadd.f32 %v1657_v14, %v1639_v7 }
 0x9f7   : > { %v1664_v26 = vmax.f32 %v1658_v19, 0.0 }
 0x9f9   : > { %v1667_v29 = vadd.f32 %v1666_v2, %v1664_v26 }
 0x9fc   : > { %v1659_v27 = vpop.f32.mrf.mxu0 }
 0x9fd   : > { %v1660_v28 = vadd.f32 %v1659_v27, %v1641_v24 }
 0x9ff   : > { %v1665_v33 = vmax.f32 %v1660_v28, 0.0 }
 0xa01   : > { %v1668_v36 = vadd.f32 %v1667_v29, %v1665_v33 }
 0xa03   : > { %v1669_v37 = vrot.slane %v1668_v36, 4 }
 0xa05   : > { %v1670_v39 = vadd.f32 %v1669_v37, %v1668_v36 }
 0xa07   : > { %v1671_v40 = vrot.slane %v1670_v39, 2 }
 0xa09   : > { %v1672_v34 = vadd.f32 %v1671_v40, %v1670_v39 }
 0xa0b   : > { %v1673_v42 = vrot.slane %v1672_v34, 1 }
 0xa0d   : > { %v1674_v43 = vadd.f32 %v1673_v42, %v1672_v34 }
 0xa0f   : > { %v1682_v44 = vmul.f32 %v1681_v32, %v1674_v43 }
 0xa11   : > { %1716 = vmatmul.f32.vlgmr.msrb.gmra.mxu1 %v1682_v44 }
 0xa8e   : > { %v1717_v1 = vpop.f32.mrf.mxu1 }
 0xa8f   : > { %v1718_v31 = vadd.f32 %v1717_v1, %v1699_v30 }
 0xa91   : > { %v1720_v0 = vmax.f32 %v1718_v31, 0.0 }
 0xa93   : > { %2177 = vmatmul.msk.f32.vlgmr.msrb.gmra.mxu2 %vm506_vm0, %v1720_v0 }
 0xb16   : > { %v1746_v49 = vpop.f32.mrf.mxu2 }
 0xb17   : > { %v1747_v50 = vadd.f32 %v1746_v49, %v1725_v48 }
 0xb19   : > { %v1750_v51 = vsel %vm1749_vm9, %v1747_v50, -inf }
 0xb1a   : > { %1751 = vmax.xlane.f32.xlu0 %v1750_v51 }
 0xb8d   : > { %v1752_v52 = vpop.xlane.xlu0 %1751 }
 0xb8e   : > { %v1753_v53 = vsub.f32 %v1747_v50, %v1752_v52 }
 0xb90   : > { %v1754_v54 = vmul.f32 1.442695, %v1753_v53 }
 0xb92   : > { %2394 = vpow2.f32 %v1754_v54 }
 0xb98   : > { %v2395_v57 = vpop.eup %2394 }
 0xb99   : > { %v1756_v58 = vsel %vm1749_vm9, %v2395_v57, 0.0 }
 0xb9a   : > { %1757 = vadd.xlane.f32.xlu1 %v1756_v58 }
 0xc0d   : > { %v1758_v59 = vpop.xlane.xlu1 %1757 }
 0xc0e   : > { %2396 = vlog2.f32 %v1758_v59 }
 0xc14   : > { %v2397_v60 = vpop.eup %2396 }
 0xc15   : > { %v1760_v61 = vmul.f32 0.6931472, %v2397_v60 }
 0xc17   : > { %v1761_v62 = vsub.f32 %v1753_v53, %v1760_v61 }
 0xc19   : > { %v1762_v63 = vperm.slane %v1761_v62, 0 }
 0xc1b   : > { %1763 = vst [vmem:[%s471_s15] sm:$0xff] %v1762_v63 }
 0xc1c   : > { %2515 = shalt.err (!%p2512_p8)
}
 0xc1d   : > { %2261 = dma.vmem_to_hbm [thread:$0]  (%p2676_p5), %s1778_s18, 128, %s1780_s26, %s1765_s28  }
 0xc1e PF: > { %s3123_s2 = sld [smem:[#allocation12_spill]]  ;;  %p2283_p9 = scmp.ge.s32.totalorder %s2558_s24, 2 }
 0xc20   : > { %p2274_p10 = pnand %p2283_p9, %p2680_p6 }
 0xc22   : > { %p2275_p11 = pneg %p2274_p10 }
 0xc24   : > { %s1791_s23 = sand.u32 1, %s3123_s2  }
 0xc25   : > { %s1792_s27 = scalar_lea.sflag [#allocation4], %s1791_s23 }
 0xc26   : > { %2541 = dma.done.wait (%p2275_p11), %s1792_s27, 128  }
 0xc27   : > { %2543 = vsyncadd (%p2275_p11), %s1792_s27, 4294967168  ;;  %s3125_s24 = sld [smem:[#allocation14_spill]]  ;;  %s3128_s21 = smov %s2550_s22 }
 0xc28   : > { %s3126_s30 = sld [smem:[#allocation13_spill]] }
 0xc29   : > { %s3127_s23 = sld [smem:[#allocation15_spill]] }
 0xc2d   : > { %p24_p12 = scmp.ge.s32.totalorder %s3125_s24, 4  }
 0xc2e   : > { %s3129_s22 = smov %s3126_s30 }
 0xc2f   :  { %26 = sbr.rel (!%p24_p12) target bundleno = 8 (0x8), region = 119 }
 0xc34   :  { %1798 = vsyncpa [#allocation3], 1 }
 0xc35   :  { %1800 = vsyncpa [#allocation3 + $0x1], 1 }
 0xc36   :  { %1801 = vsyncpa [#allocation6], 1 }
 0xc37   :  { %1802 = vsyncpa [#allocation4], 1 }
 0xc38   :  { %1804 = vsyncpa [#allocation4 + $0x1], 1 }

</bundles_post_ra>
